<compile_context>
chip_gen: v6e
topology: v6e:2x2x1
jax: 0.10.0
libtpu: 0.0.40
codegen_flags: <defaults>
</compile_context>

<pallas_src>
import functools
import math

import jax
import jax.numpy as jnp
from jax.experimental import pallas as pl
from jax.experimental.pallas import tpu as pltpu

_LANE = 128  # TPU vreg lane width; the embedding and MLP hidden dims are padded to this.


def _round_up(x, m):
    return ((x + m - 1) // m) * m


def _layernorm_padded(x, gamma, beta, inv_e, eps=1e-5):
    # PyTorch nn.LayerNorm semantics (biased variance, eps inside sqrt, affine) computed
    # over a row whose trailing lanes are zero-padded: sums run over the full padded row
    # but are divided by the TRUE width (inv_e = 1/E).  gamma/beta are zero on padded
    # lanes, so the output stays exactly zero there.
    mean = jnp.sum(x, axis=-1, keepdims=True) * inv_e
    meansq = jnp.sum(x * x, axis=-1, keepdims=True) * inv_e
    var = jnp.maximum(meansq - mean * mean, 0.0)
    return (x - mean) * jax.lax.rsqrt(var + eps) * gamma + beta


def _erf_approx(x):
    # Abramowitz & Stegun 7.1.26 (exp + polynomial); divide moved onto the EUP.
    a1, a2, a3, a4, a5 = 0.254829592, -0.284496736, 1.421413741, -1.453152027, 1.061405429
    p = 0.3275911
    sign = jnp.where(x >= 0.0, 1.0, -1.0)
    ax = jnp.abs(x)
    t = pl.reciprocal(1.0 + p * ax, approx=True)
    poly = t * (a1 + t * (a2 + t * (a3 + t * (a4 + t * a5))))
    return sign * (1.0 - poly * jnp.exp(-ax * ax))


def _gelu_exact(x):
    # nn.GELU() default: 0.5 * x * (1 + erf(x / sqrt(2)))
    return 0.5 * x * (1.0 + _erf_approx(x * (1.0 / math.sqrt(2.0))))


def attention_block_kernel(
    patches_ref,        # (1, N, K)    bf16   this batch element's im2col patches
    w_pe_ref,           # (K, Ep)      bf16   conv3d patch-embed as matmul (cols padded)
    pos_ref,            # (N, Ep)      f32    positional emb + conv bias (cols padded)
    w_qkv_ref,          # (Ep, 3*Ep)   bf16   fused Q|K|V (scale folded into Q)
    wo_ref,             # (Ep, Ep)     bf16
    w1_ref,             # (Ep, Mp)     bf16
    w2_ref,             # (Mp, Ep)     bf16
    vecs_ref,           # (8, 3*Ep)    f32    packed small vectors (see wrapper)
    out_ref,            # (1, N, Ep)   f32    lane-dense output (wrapper slices to E)
    *, e_true,
):
    f32 = jnp.float32
    bf16 = jnp.bfloat16
    ep = wo_ref.shape[0]
    mp = w1_ref.shape[1]
    inv_e = 1.0 / e_true

    # Packed small parameters: one DMA window, whole-vreg (128-aligned) lane slices.
    b_qkv = vecs_ref[0:1, :]            # (1, 3*Ep)
    b1 = vecs_ref[1:2, 0:mp]            # (1, Mp)
    ln1_g = vecs_ref[2:3, 0:ep]
    ln1_b = vecs_ref[3:4, 0:ep]
    ln2_g = vecs_ref[4:5, 0:ep]
    ln2_b = vecs_ref[5:6, 0:ep]
    bo = vecs_ref[6:7, 0:ep]
    b2 = vecs_ref[7:8, 0:ep]

    # --- patch embedding (Conv3d k=2,s=2 as matmul) + positional embedding (+ conv bias) ---
    emb = jnp.dot(patches_ref[0], w_pe_ref[...], preferred_element_type=f32) + pos_ref[...]
    h = emb                              # residual; embedding_dropout = identity (eval)

    # --- attention ---
    x = _layernorm_padded(emb, ln1_g, ln1_b, inv_e)
    qkv = (jnp.dot(x.astype(bf16), w_qkv_ref[...], preferred_element_type=f32)
           + b_qkv).astype(bf16)         # cast before slicing: halves the live intermediate
    q = qkv[:, 0:ep]
    k = qkv[:, ep:2 * ep]
    v = qkv[:, 2 * ep:3 * ep]

    dn = (((1,), (1,)), ((), ()))        # contract last dims: q @ k^T, no XLU transpose
    scores = jax.lax.dot_general(q, k, dn, preferred_element_type=f32)  # 1/sqrt(hs) folded
    scores = scores - jnp.max(scores, axis=-1, keepdims=True)
    e = jnp.exp(scores)
    probs = e * pl.reciprocal(jnp.sum(e, axis=-1, keepdims=True), approx=True)
    ctx = jnp.dot(probs.astype(bf16), v, preferred_element_type=f32)    # (N, Ep)

    attn_out = jnp.dot(ctx.astype(bf16), wo_ref[...], preferred_element_type=f32) + bo
    x2 = attn_out + h                    # projection_dropout = identity
    h2 = x2

    # --- MLP ---
    y = _layernorm_padded(x2, ln2_g, ln2_b, inv_e)
    y = jnp.dot(y.astype(bf16), w1_ref[...], preferred_element_type=f32) + b1
    y = _gelu_exact(y)                   # mlp_dropout = identity
    y = jnp.dot(y.astype(bf16), w2_ref[...], preferred_element_type=f32) + b2
    out_ref[0] = (y + h2).astype(out_ref.dtype)


def attention_forward(x, params, *, num_heads=1, patch_size=2):
    """Forward pass of the Attention module.  Returns (tokens, attn_map=None)."""
    B, C, D, H, W = x.shape
    ps = patch_size
    Dp, Hp, Wp = D // ps, H // ps, W // ps
    N = Dp * Hp * Wp
    K = C * ps ** 3
    E = params["w_pe"].shape[1]
    M = params["w1"].shape[1]
    assert num_heads == 1, "reference context.view() only type-checks for num_heads == 1"
    head_size = E // num_heads

    bf16, f32 = jnp.bfloat16, jnp.float32
    e_pad = _round_up(E, _LANE)
    m_pad = _round_up(M, _LANE)

    # Glue: im2col for the 2x2x2 stride-2 Conv3d (bf16 halves the streamed DMA).
    patches = x.reshape(B, C, Dp, ps, Hp, ps, Wp, ps)
    patches = patches.transpose(0, 2, 4, 6, 1, 3, 5, 7)      # (B, Dp, Hp, Wp, C, 2, 2, 2)
    patches = patches.reshape(B, N, K).astype(bf16)

    def pad2(w, rows, cols):
        r, c = w.shape
        return jnp.pad(w, ((0, rows - r), (0, cols - c)))

    # One-time constant folds: softmax scale into Q weights/bias, conv bias into pos.
    scale = 1.0 / math.sqrt(head_size)
    wq = params["wq"] * scale
    bq = params["bq"] * scale

    w_qkv = jnp.concatenate(
        [pad2(wq, e_pad, e_pad),
         pad2(params["wk"], e_pad, e_pad),
         pad2(params["wv"], e_pad, e_pad)], axis=1).astype(bf16)          # (Ep, 3*Ep)
    b_qkv = jnp.concatenate(
        [pad2(bq, 1, e_pad),
         pad2(params["bk"], 1, e_pad),
         pad2(params["bv"], 1, e_pad)], axis=1).astype(f32)               # (1, 3*Ep)

    w_pe = pad2(params["w_pe"], K, e_pad).astype(bf16)
    pos_eff = pad2(params["pos"] + params["b_pe"], N, e_pad).astype(f32)  # (N, Ep)
    wo = pad2(params["wo"], e_pad, e_pad).astype(bf16)
    w1 = pad2(params["w1"], e_pad, m_pad).astype(bf16)
    w2 = pad2(params["w2"], m_pad, e_pad).astype(bf16)

    vw = 3 * e_pad
    def vrow(v):
        return pad2(v.astype(f32), 1, vw)
    vecs = jnp.concatenate([
        b_qkv,                     # row 0: fused Q|K|V bias (Q part pre-scaled)
        vrow(params["b1"]),        # row 1: fc1 bias (first m_pad lanes)
        vrow(params["ln1_g"]),     # row 2
        vrow(params["ln1_b"]),     # row 3
        vrow(params["ln2_g"]),     # row 4
        vrow(params["ln2_b"]),     # row 5
        vrow(params["bo"]),        # row 6
        vrow(params["b2"]),        # row 7
    ], axis=0)                     # (8, 3*Ep) f32 — single DMA for all small params

    inputs = [patches, w_pe, pos_eff, w_qkv, wo, w1, w2, vecs]

    def const_spec(shape):
        nd = len(shape)
        return pl.BlockSpec(shape, lambda b, _nd=nd: (0,) * _nd)   # resident across grid

    in_specs = [pl.BlockSpec((1, N, K), lambda b: (b, 0, 0))] + \
               [const_spec(a.shape) for a in inputs[1:]]
    out_specs = pl.BlockSpec((1, N, e_pad), lambda b: (b, 0, 0))

    kernel = functools.partial(attention_block_kernel, e_true=E)

    # Advisory cost hint so XLA can overlap the custom call with surrounding ops.
    flops = 2 * B * N * (K * e_pad + e_pad * 3 * e_pad + 2 * N * e_pad
                         + e_pad * e_pad + 2 * e_pad * m_pad)
    transcendentals = B * (N * N + 2 * N * m_pad)        # softmax exp + GELU exp/recip
    bytes_accessed = int(sum(int(a.size) * a.dtype.itemsize for a in inputs)
                         + B * N * e_pad * 4)

    out = pl.pallas_call(
        kernel,
        out_shape=jax.ShapeDtypeStruct((B, N, e_pad), jnp.float32),
        grid=(B,),
        in_specs=in_specs,
        out_specs=out_specs,
        compiler_params=pltpu.CompilerParams(
            # Per-batch output blocks are disjoint -> v7x can split steps across its 2 TCs.
            dimension_semantics=("parallel",),
            # Right-sized: real window+intermediate footprint is ~1 MiB at these shapes.
            vmem_limit_bytes=4 * 1024 * 1024,
        ),
        cost_estimate=pl.CostEstimate(
            flops=int(flops),
            transcendentals=int(transcendentals),
            bytes_accessed=bytes_accessed),
    )(*inputs)

    # Lane-dense (Ep=128) store inside the kernel; slice back to the true embedding dim.
    return out[:, :, :E], None   # attn_map is None in the reference (visualize=False)


def init_params(key, *, in_channels, embedding_size, mlp_size, n_patch, patch_size=2):
    """Deterministic synthetic parameters matching the module's shapes."""
    C, E, M, N, ps = in_channels, embedding_size, mlp_size, n_patch, patch_size
    K = C * ps ** 3
    keys = jax.random.split(key, 16)

    def rnd(k, shape, scale=0.05):
        return (scale * jax.random.normal(k, shape)).astype(jnp.float32)

    # Conv3d weight in PyTorch layout (E, C, 2, 2, 2) -> matmul weight (K, E).
    conv_w = rnd(keys[0], (E, C, ps, ps, ps))
    w_pe = conv_w.reshape(E, K).T

    return dict(
        w_pe=w_pe,
        b_pe=rnd(keys[1], (1, E)),
        # positional_embeddings is zero-initialized in PyTorch; use small random values
        # here so the addition path is actually exercised.
        pos=rnd(keys[2], (N, E)),
        ln1_g=jnp.ones((1, E), jnp.float32),
        ln1_b=jnp.zeros((1, E), jnp.float32),
        wq=rnd(keys[3], (E, E)), bq=rnd(keys[4], (1, E)),
        wk=rnd(keys[5], (E, E)), bk=rnd(keys[6], (1, E)),
        wv=rnd(keys[7], (E, E)), bv=rnd(keys[8], (1, E)),
        wo=rnd(keys[9], (E, E)), bo=rnd(keys[10], (1, E)),
        ln2_g=jnp.ones((1, E), jnp.float32),
        ln2_b=jnp.zeros((1, E), jnp.float32),
        w1=rnd(keys[11], (E, M)), b1=rnd(keys[12], (1, M), scale=1e-6),
        w2=rnd(keys[13], (M, E)), b2=rnd(keys[14], (1, E), scale=1e-6),
    )


if __name__ == "__main__":
    # Small config consistent with the module: patch_size=2 and n_patch=64 imply an
    # 8x8x8 volume; output_image=False / num_heads=1 (see header note).
    B, C, D, H, W = 2, 4, 8, 8, 8
    E, M, NUM_HEADS = 32, 64, 1
    N = (D // 2) * (H // 2) * (W // 2)
    assert N == 64  # matches self.n_patch in the module

    key = jax.random.PRNGKey(0)
    kx, kp = jax.random.split(key)
    x = jax.random.normal(kx, (B, C, D, H, W), dtype=jnp.float32)
    params = init_params(kp, in_channels=C, embedding_size=E, mlp_size=M, n_patch=N)

    out, attn_map = attention_forward(x, params, num_heads=NUM_HEADS)
    out = jax.block_until_ready(out)
    assert out.shape == (B, N, E) and out.dtype == jnp.float32
    assert attn_map is None
    print("KERNEL_OK")
</pallas_src>

<mosaic_0001>
module attributes {stable_mosaic.version = 11 : i64} {
  func.func @attention_block_kernel(%arg0: i32, %arg1: memref<1x64x32xbf16, #tpu.memory_space<vmem>>, %arg2: memref<32x128xbf16, #tpu.memory_space<vmem>>, %arg3: memref<64x128xf32, #tpu.memory_space<vmem>>, %arg4: memref<128x384xbf16, #tpu.memory_space<vmem>>, %arg5: memref<128x128xbf16, #tpu.memory_space<vmem>>, %arg6: memref<128x128xbf16, #tpu.memory_space<vmem>>, %arg7: memref<128x128xbf16, #tpu.memory_space<vmem>>, %arg8: memref<8x384xf32, #tpu.memory_space<vmem>>, %arg9: memref<1x64x128xf32, #tpu.memory_space<vmem>>) attributes {dimension_semantics = [#tpu.dimension_semantics<parallel>], iteration_bounds = array<i64: 2>, scalar_prefetch = 0 : i64, scratch_operands = 0 : i64, tpu.core_type = #tpu.core_type<tc>, window_params = [{transform_indices = @transform_0, window_bounds = array<i64: 1, 64, 32>}, {pipeline_mode = #tpu.pipeline_mode<synchronous>, transform_indices = @transform_1, window_bounds = array<i64: 32, 128>}, {pipeline_mode = #tpu.pipeline_mode<synchronous>, transform_indices = @transform_2, window_bounds = array<i64: 64, 128>}, {pipeline_mode = #tpu.pipeline_mode<synchronous>, transform_indices = @transform_3, window_bounds = array<i64: 128, 384>}, {pipeline_mode = #tpu.pipeline_mode<synchronous>, transform_indices = @transform_4, window_bounds = array<i64: 128, 128>}, {pipeline_mode = #tpu.pipeline_mode<synchronous>, transform_indices = @transform_5, window_bounds = array<i64: 128, 128>}, {pipeline_mode = #tpu.pipeline_mode<synchronous>, transform_indices = @transform_6, window_bounds = array<i64: 128, 128>}, {pipeline_mode = #tpu.pipeline_mode<synchronous>, transform_indices = @transform_7, window_bounds = array<i64: 8, 384>}, {transform_indices = @transform_8, window_bounds = array<i64: 1, 64, 128>}]} {
    %c0 = arith.constant 0 : index
    %c0_0 = arith.constant 0 : index
    %0 = vector.load %arg8[%c0, %c0_0] : memref<8x384xf32, #tpu.memory_space<vmem>>, vector<1x384xf32>
    %c1 = arith.constant 1 : index
    %c0_1 = arith.constant 0 : index
    %1 = vector.load %arg8[%c1, %c0_1] : memref<8x384xf32, #tpu.memory_space<vmem>>, vector<1x128xf32>
    %c2 = arith.constant 2 : index
    %c0_2 = arith.constant 0 : index
    %2 = vector.load %arg8[%c2, %c0_2] : memref<8x384xf32, #tpu.memory_space<vmem>>, vector<1x128xf32>
    %c3 = arith.constant 3 : index
    %c0_3 = arith.constant 0 : index
    %3 = vector.load %arg8[%c3, %c0_3] : memref<8x384xf32, #tpu.memory_space<vmem>>, vector<1x128xf32>
    %c4 = arith.constant 4 : index
    %c0_4 = arith.constant 0 : index
    %4 = vector.load %arg8[%c4, %c0_4] : memref<8x384xf32, #tpu.memory_space<vmem>>, vector<1x128xf32>
    %c5 = arith.constant 5 : index
    %c0_5 = arith.constant 0 : index
    %5 = vector.load %arg8[%c5, %c0_5] : memref<8x384xf32, #tpu.memory_space<vmem>>, vector<1x128xf32>
    %c6 = arith.constant 6 : index
    %c0_6 = arith.constant 0 : index
    %6 = vector.load %arg8[%c6, %c0_6] : memref<8x384xf32, #tpu.memory_space<vmem>>, vector<1x128xf32>
    %c7 = arith.constant 7 : index
    %c0_7 = arith.constant 0 : index
    %7 = vector.load %arg8[%c7, %c0_7] : memref<8x384xf32, #tpu.memory_space<vmem>>, vector<1x128xf32>
    %c0_8 = arith.constant 0 : index
    %c0_9 = arith.constant 0 : index
    %c0_10 = arith.constant 0 : index
    %8 = vector.load %arg1[%c0_8, %c0_9, %c0_10] : memref<1x64x32xbf16, #tpu.memory_space<vmem>>, vector<1x64x32xbf16>
    %9 = vector.shape_cast %8 : vector<1x64x32xbf16> to vector<64x32xbf16>
    %c0_11 = arith.constant 0 : index
    %c0_12 = arith.constant 0 : index
    %10 = vector.load %arg2[%c0_11, %c0_12] : memref<32x128xbf16, #tpu.memory_space<vmem>>, vector<32x128xbf16>
    %cst = arith.constant dense<0.000000e+00> : vector<64x128xf32>
    %11 = tpu.matmul %9, %10, %cst {dimension_numbers = #tpu.dot_dimension_numbers<[1], [0], [0], [1], [0, 0, 1, 1], [], []>} : vector<64x32xbf16>, vector<32x128xbf16>, vector<64x128xf32> -> vector<64x128xf32>
    %c0_13 = arith.constant 0 : index
    %c0_14 = arith.constant 0 : index
    %12 = vector.load %arg3[%c0_13, %c0_14] : memref<64x128xf32, #tpu.memory_space<vmem>>, vector<64x128xf32>
    %13 = arith.addf %11, %12 : vector<64x128xf32>
    %cst_15 = arith.constant dense<0.000000e+00> : vector<64xf32>
    %14 = vector.multi_reduction <add>, %13, %cst_15 [1] : vector<64x128xf32> to vector<64xf32>
    %15 = vector.shape_cast %14 : vector<64xf32> to vector<64x1xf32>
    %cst_16 = arith.constant 3.125000e-02 : f32
    %16 = vector.broadcast %cst_16 : f32 to vector<64x1xf32>
    %17 = arith.mulf %15, %16 : vector<64x1xf32>
    %18 = arith.mulf %13, %13 : vector<64x128xf32>
    %cst_17 = arith.constant dense<0.000000e+00> : vector<64xf32>
    %19 = vector.multi_reduction <add>, %18, %cst_17 [1] : vector<64x128xf32> to vector<64xf32>
    %20 = vector.shape_cast %19 : vector<64xf32> to vector<64x1xf32>
    %cst_18 = arith.constant 3.125000e-02 : f32
    %21 = vector.broadcast %cst_18 : f32 to vector<64x1xf32>
    %22 = arith.mulf %20, %21 : vector<64x1xf32>
    %23 = arith.mulf %17, %17 : vector<64x1xf32>
    %24 = arith.subf %22, %23 : vector<64x1xf32>
    %cst_19 = arith.constant 0.000000e+00 : f32
    %25 = vector.broadcast %cst_19 : f32 to vector<64x1xf32>
    %26 = arith.maximumf %24, %25 : vector<64x1xf32>
    %27 = vector.broadcast %17 : vector<64x1xf32> to vector<64x128xf32>
    %28 = arith.subf %13, %27 : vector<64x128xf32>
    %cst_20 = arith.constant 9.99999974E-6 : f32
    %29 = vector.broadcast %cst_20 : f32 to vector<64x1xf32>
    %30 = arith.addf %26, %29 : vector<64x1xf32>
    %31 = math.rsqrt %30 : vector<64x1xf32>
    %32 = vector.broadcast %31 : vector<64x1xf32> to vector<64x128xf32>
    %33 = arith.mulf %28, %32 : vector<64x128xf32>
    %34 = vector.broadcast %2 : vector<1x128xf32> to vector<64x128xf32>
    %35 = arith.mulf %33, %34 : vector<64x128xf32>
    %36 = vector.broadcast %3 : vector<1x128xf32> to vector<64x128xf32>
    %37 = arith.addf %35, %36 : vector<64x128xf32>
    %38 = arith.truncf %37 : vector<64x128xf32> to vector<64x128xbf16>
    %c0_21 = arith.constant 0 : index
    %c0_22 = arith.constant 0 : index
    %39 = vector.load %arg4[%c0_21, %c0_22] : memref<128x384xbf16, #tpu.memory_space<vmem>>, vector<128x384xbf16>
    %cst_23 = arith.constant dense<0.000000e+00> : vector<64x384xf32>
    %40 = tpu.matmul %38, %39, %cst_23 {dimension_numbers = #tpu.dot_dimension_numbers<[1], [0], [0], [1], [0, 0, 1, 1], [], []>} : vector<64x128xbf16>, vector<128x384xbf16>, vector<64x384xf32> -> vector<64x384xf32>
    %41 = vector.broadcast %0 : vector<1x384xf32> to vector<64x384xf32>
    %42 = arith.addf %40, %41 : vector<64x384xf32>
    %43 = arith.truncf %42 : vector<64x384xf32> to vector<64x384xbf16>
    %44 = vector.extract_strided_slice %43 {offsets = [0, 0], sizes = [64, 128], strides = [1, 1]} : vector<64x384xbf16> to vector<64x128xbf16>
    %45 = vector.extract_strided_slice %43 {offsets = [0, 128], sizes = [64, 128], strides = [1, 1]} : vector<64x384xbf16> to vector<64x128xbf16>
    %46 = vector.extract_strided_slice %43 {offsets = [0, 256], sizes = [64, 128], strides = [1, 1]} : vector<64x384xbf16> to vector<64x128xbf16>
    %cst_24 = arith.constant dense<0.000000e+00> : vector<64x64xf32>
    %47 = tpu.matmul %44, %45, %cst_24 {dimension_numbers = #tpu.dot_dimension_numbers<[1], [1], [0], [0], [0, 0, 1, 0], [], []>} : vector<64x128xbf16>, vector<64x128xbf16>, vector<64x64xf32> -> vector<64x64xf32>
    %cst_25 = arith.constant dense<0xFF800000> : vector<64xf32>
    %48 = vector.multi_reduction <maximumf>, %47, %cst_25 [1] : vector<64x64xf32> to vector<64xf32>
    %49 = vector.shape_cast %48 : vector<64xf32> to vector<64x1xf32>
    %50 = vector.broadcast %49 : vector<64x1xf32> to vector<64x64xf32>
    %51 = arith.subf %47, %50 : vector<64x64xf32>
    %52 = math.exp %51 : vector<64x64xf32>
    %cst_26 = arith.constant dense<0.000000e+00> : vector<64xf32>
    %53 = vector.multi_reduction <add>, %52, %cst_26 [1] : vector<64x64xf32> to vector<64xf32>
    %54 = vector.shape_cast %53 : vector<64xf32> to vector<64x1xf32>
    %55 = tpu.reciprocal %54 {approx = true} : vector<64x1xf32> -> vector<64x1xf32>
    %56 = vector.broadcast %55 : vector<64x1xf32> to vector<64x64xf32>
    %57 = arith.mulf %52, %56 : vector<64x64xf32>
    %58 = arith.truncf %57 : vector<64x64xf32> to vector<64x64xbf16>
    %cst_27 = arith.constant dense<0.000000e+00> : vector<64x128xf32>
    %59 = tpu.matmul %58, %46, %cst_27 {dimension_numbers = #tpu.dot_dimension_numbers<[1], [0], [0], [1], [0, 0, 1, 1], [], []>} : vector<64x64xbf16>, vector<64x128xbf16>, vector<64x128xf32> -> vector<64x128xf32>
    %60 = arith.truncf %59 : vector<64x128xf32> to vector<64x128xbf16>
    %c0_28 = arith.constant 0 : index
    %c0_29 = arith.constant 0 : index
    %61 = vector.load %arg5[%c0_28, %c0_29] : memref<128x128xbf16, #tpu.memory_space<vmem>>, vector<128x128xbf16>
    %cst_30 = arith.constant dense<0.000000e+00> : vector<64x128xf32>
    %62 = tpu.matmul %60, %61, %cst_30 {dimension_numbers = #tpu.dot_dimension_numbers<[1], [0], [0], [1], [0, 0, 1, 1], [], []>} : vector<64x128xbf16>, vector<128x128xbf16>, vector<64x128xf32> -> vector<64x128xf32>
    %63 = vector.broadcast %6 : vector<1x128xf32> to vector<64x128xf32>
    %64 = arith.addf %62, %63 : vector<64x128xf32>
    %65 = arith.addf %64, %13 : vector<64x128xf32>
    %cst_31 = arith.constant dense<0.000000e+00> : vector<64xf32>
    %66 = vector.multi_reduction <add>, %65, %cst_31 [1] : vector<64x128xf32> to vector<64xf32>
    %67 = vector.shape_cast %66 : vector<64xf32> to vector<64x1xf32>
    %cst_32 = arith.constant 3.125000e-02 : f32
    %68 = vector.broadcast %cst_32 : f32 to vector<64x1xf32>
    %69 = arith.mulf %67, %68 : vector<64x1xf32>
    %70 = arith.mulf %65, %65 : vector<64x128xf32>
    %cst_33 = arith.constant dense<0.000000e+00> : vector<64xf32>
    %71 = vector.multi_reduction <add>, %70, %cst_33 [1] : vector<64x128xf32> to vector<64xf32>
    %72 = vector.shape_cast %71 : vector<64xf32> to vector<64x1xf32>
    %cst_34 = arith.constant 3.125000e-02 : f32
    %73 = vector.broadcast %cst_34 : f32 to vector<64x1xf32>
    %74 = arith.mulf %72, %73 : vector<64x1xf32>
    %75 = arith.mulf %69, %69 : vector<64x1xf32>
    %76 = arith.subf %74, %75 : vector<64x1xf32>
    %cst_35 = arith.constant 0.000000e+00 : f32
    %77 = vector.broadcast %cst_35 : f32 to vector<64x1xf32>
    %78 = arith.maximumf %76, %77 : vector<64x1xf32>
    %79 = vector.broadcast %69 : vector<64x1xf32> to vector<64x128xf32>
    %80 = arith.subf %65, %79 : vector<64x128xf32>
    %cst_36 = arith.constant 9.99999974E-6 : f32
    %81 = vector.broadcast %cst_36 : f32 to vector<64x1xf32>
    %82 = arith.addf %78, %81 : vector<64x1xf32>
    %83 = math.rsqrt %82 : vector<64x1xf32>
    %84 = vector.broadcast %83 : vector<64x1xf32> to vector<64x128xf32>
    %85 = arith.mulf %80, %84 : vector<64x128xf32>
    %86 = vector.broadcast %4 : vector<1x128xf32> to vector<64x128xf32>
    %87 = arith.mulf %85, %86 : vector<64x128xf32>
    %88 = vector.broadcast %5 : vector<1x128xf32> to vector<64x128xf32>
    %89 = arith.addf %87, %88 : vector<64x128xf32>
    %90 = arith.truncf %89 : vector<64x128xf32> to vector<64x128xbf16>
    %c0_37 = arith.constant 0 : index
    %c0_38 = arith.constant 0 : index
    %91 = vector.load %arg6[%c0_37, %c0_38] : memref<128x128xbf16, #tpu.memory_space<vmem>>, vector<128x128xbf16>
    %cst_39 = arith.constant dense<0.000000e+00> : vector<64x128xf32>
    %92 = tpu.matmul %90, %91, %cst_39 {dimension_numbers = #tpu.dot_dimension_numbers<[1], [0], [0], [1], [0, 0, 1, 1], [], []>} : vector<64x128xbf16>, vector<128x128xbf16>, vector<64x128xf32> -> vector<64x128xf32>
    %93 = vector.broadcast %1 : vector<1x128xf32> to vector<64x128xf32>
    %94 = arith.addf %92, %93 : vector<64x128xf32>
    %cst_40 = arith.constant 5.000000e-01 : f32
    %95 = vector.broadcast %cst_40 : f32 to vector<64x128xf32>
    %96 = arith.mulf %95, %94 : vector<64x128xf32>
    %cst_41 = arith.constant 0.707106769 : f32
    %97 = vector.broadcast %cst_41 : f32 to vector<64x128xf32>
    %98 = arith.mulf %94, %97 : vector<64x128xf32>
    %cst_42 = arith.constant 0.000000e+00 : f32
    %99 = vector.broadcast %cst_42 : f32 to vector<64x128xf32>
    %100 = arith.cmpf oge, %98, %99 : vector<64x128xf32>
    %cst_43 = arith.constant 1.000000e+00 : f32
    %cst_44 = arith.constant -1.000000e+00 : f32
    %101 = vector.broadcast %cst_43 : f32 to vector<64x128xf32>
    %102 = vector.broadcast %cst_44 : f32 to vector<64x128xf32>
    %103 = arith.select %100, %101, %102 : vector<64x128xi1>, vector<64x128xf32>
    %104 = math.absf %98 : vector<64x128xf32>
    %cst_45 = arith.constant 0.327591091 : f32
    %105 = vector.broadcast %cst_45 : f32 to vector<64x128xf32>
    %106 = arith.mulf %105, %104 : vector<64x128xf32>
    %cst_46 = arith.constant 1.000000e+00 : f32
    %107 = vector.broadcast %cst_46 : f32 to vector<64x128xf32>
    %108 = arith.addf %107, %106 : vector<64x128xf32>
    %109 = tpu.reciprocal %108 {approx = true} : vector<64x128xf32> -> vector<64x128xf32>
    %cst_47 = arith.constant 1.06140542 : f32
    %110 = vector.broadcast %cst_47 : f32 to vector<64x128xf32>
    %111 = arith.mulf %109, %110 : vector<64x128xf32>
    %cst_48 = arith.constant -1.45315206 : f32
    %112 = vector.broadcast %cst_48 : f32 to vector<64x128xf32>
    %113 = arith.addf %112, %111 : vector<64x128xf32>
    %114 = arith.mulf %109, %113 : vector<64x128xf32>
    %cst_49 = arith.constant 1.42141378 : f32
    %115 = vector.broadcast %cst_49 : f32 to vector<64x128xf32>
    %116 = arith.addf %115, %114 : vector<64x128xf32>
    %117 = arith.mulf %109, %116 : vector<64x128xf32>
    %cst_50 = arith.constant -0.284496725 : f32
    %118 = vector.broadcast %cst_50 : f32 to vector<64x128xf32>
    %119 = arith.addf %118, %117 : vector<64x128xf32>
    %120 = arith.mulf %109, %119 : vector<64x128xf32>
    %cst_51 = arith.constant 0.254829586 : f32
    %121 = vector.broadcast %cst_51 : f32 to vector<64x128xf32>
    %122 = arith.addf %121, %120 : vector<64x128xf32>
    %123 = arith.mulf %109, %122 : vector<64x128xf32>
    %cst_52 = arith.constant 0.000000e+00 : f32
    %124 = vector.broadcast %cst_52 : f32 to vector<64x128xf32>
    %125 = arith.subf %124, %104 : vector<64x128xf32>
    %126 = arith.mulf %125, %104 : vector<64x128xf32>
    %127 = math.exp %126 : vector<64x128xf32>
    %128 = arith.mulf %123, %127 : vector<64x128xf32>
    %cst_53 = arith.constant 1.000000e+00 : f32
    %129 = vector.broadcast %cst_53 : f32 to vector<64x128xf32>
    %130 = arith.subf %129, %128 : vector<64x128xf32>
    %131 = arith.mulf %103, %130 : vector<64x128xf32>
    %cst_54 = arith.constant 1.000000e+00 : f32
    %132 = vector.broadcast %cst_54 : f32 to vector<64x128xf32>
    %133 = arith.addf %132, %131 : vector<64x128xf32>
    %134 = arith.mulf %96, %133 : vector<64x128xf32>
    %135 = arith.truncf %134 : vector<64x128xf32> to vector<64x128xbf16>
    %c0_55 = arith.constant 0 : index
    %c0_56 = arith.constant 0 : index
    %136 = vector.load %arg7[%c0_55, %c0_56] : memref<128x128xbf16, #tpu.memory_space<vmem>>, vector<128x128xbf16>
    %cst_57 = arith.constant dense<0.000000e+00> : vector<64x128xf32>
    %137 = tpu.matmul %135, %136, %cst_57 {dimension_numbers = #tpu.dot_dimension_numbers<[1], [0], [0], [1], [0, 0, 1, 1], [], []>} : vector<64x128xbf16>, vector<128x128xbf16>, vector<64x128xf32> -> vector<64x128xf32>
    %138 = vector.broadcast %7 : vector<1x128xf32> to vector<64x128xf32>
    %139 = arith.addf %137, %138 : vector<64x128xf32>
    %140 = arith.addf %139, %65 : vector<64x128xf32>
    %c0_58 = arith.constant 0 : index
    %c0_59 = arith.constant 0 : index
    %c0_60 = arith.constant 0 : index
    %141 = vector.load %arg9[%c0_58, %c0_59, %c0_60] : memref<1x64x128xf32, #tpu.memory_space<vmem>>, vector<1x64x128xf32>
    %142 = vector.shape_cast %141 : vector<1x64x128xf32> to vector<64x128xf32>
    %143 = vector.shape_cast %140 : vector<64x128xf32> to vector<1x64x128xf32>
    tpu.vector_store %arg9[%c0_58, %c0_59, %c0_60], %143 {strides = array<i32>} : memref<1x64x128xf32, #tpu.memory_space<vmem>>, vector<1x64x128xf32>,
    return
  }
  func.func @transform_0(%arg0: i32) -> (i32, i32, i32) {
    %c0_i32 = arith.constant 0 : i32
    %c0_i32_0 = arith.constant 0 : i32
    %c0_i32_1 = arith.constant 0 : i32
    return %arg0, %c0_i32, %c0_i32_0 : i32, i32, i32
  }
  func.func @transform_1(%arg0: i32) -> (i32, i32) {
    %c0_i32 = arith.constant 0 : i32
    %c0_i32_0 = arith.constant 0 : i32
    %c0_i32_1 = arith.constant 0 : i32
    return %c0_i32, %c0_i32_0 : i32, i32
  }
  func.func @transform_2(%arg0: i32) -> (i32, i32) {
    %c0_i32 = arith.constant 0 : i32
    %c0_i32_0 = arith.constant 0 : i32
    %c0_i32_1 = arith.constant 0 : i32
    return %c0_i32, %c0_i32_0 : i32, i32
  }
  func.func @transform_3(%arg0: i32) -> (i32, i32) {
    %c0_i32 = arith.constant 0 : i32
    %c0_i32_0 = arith.constant 0 : i32
    %c0_i32_1 = arith.constant 0 : i32
    return %c0_i32, %c0_i32_0 : i32, i32
  }
  func.func @transform_4(%arg0: i32) -> (i32, i32) {
    %c0_i32 = arith.constant 0 : i32
    %c0_i32_0 = arith.constant 0 : i32
    %c0_i32_1 = arith.constant 0 : i32
    return %c0_i32, %c0_i32_0 : i32, i32
  }
  func.func @transform_5(%arg0: i32) -> (i32, i32) {
    %c0_i32 = arith.constant 0 : i32
    %c0_i32_0 = arith.constant 0 : i32
    %c0_i32_1 = arith.constant 0 : i32
    return %c0_i32, %c0_i32_0 : i32, i32
  }
  func.func @transform_6(%arg0: i32) -> (i32, i32) {
    %c0_i32 = arith.constant 0 : i32
    %c0_i32_0 = arith.constant 0 : i32
    %c0_i32_1 = arith.constant 0 : i32
    return %c0_i32, %c0_i32_0 : i32, i32
  }
  func.func @transform_7(%arg0: i32) -> (i32, i32) {
    %c0_i32 = arith.constant 0 : i32
    %c0_i32_0 = arith.constant 0 : i32
    %c0_i32_1 = arith.constant 0 : i32
    return %c0_i32, %c0_i32_0 : i32, i32
  }
  func.func @transform_8(%arg0: i32) -> (i32, i32, i32) {
    %c0_i32 = arith.constant 0 : i32
    %c0_i32_0 = arith.constant 0 : i32
    %c0_i32_1 = arith.constant 0 : i32
    return %arg0, %c0_i32, %c0_i32_0 : i32, i32, i32
  }
}

</mosaic_0001>

<bundles_post_ra>
// kernel: tpu_custom_call.1
= control target key start
LH: loop header
LB: loop body
LE: loop exit
PB: predicated region body
PF: predicated region fallthrough
CT: control target
= control target key end

     0   :  { %13 = vsyncpa [#allocation3], 0  ;;  %s3507_s0 = inlined_call_operand.vmem [shape: bf16[2,64,32], index: 0, kind: input, shape index: {}]   ;;  %s3508_s1 = inlined_call_operand.hbm [shape: bf16[32,128], index: 1, kind: input, shape index: {}]   ;;  %s3509_s2 = inlined_call_operand.vmem [shape: f32[64,128], index: 2, kind: input, shape index: {}]   ;;  %s3510_s3 = inlined_call_operand.hbm [shape: bf16[128,384], index: 3, kind: input, shape index: {}]   ;;  %s3511_s4 = inlined_call_operand.hbm [shape: bf16[128,128], index: 4, kind: input, shape index: {}]   ;;  %s3512_s5 = inlined_call_operand.hbm [shape: bf16[128,128], index: 5, kind: input, shape index: {}]   ;;  %s3513_s6 = inlined_call_operand.hbm [shape: bf16[128,128], index: 6, kind: input, shape index: {}]   ;;  %s3514_s7 = inlined_call_operand.vmem [shape: f32[8,384], index: 7, kind: input, shape index: {}]   ;;  %s3515_s8 = inlined_call_operand.hbm [shape: f32[2,64,128], index: 8, kind: output, shape index: {}]  }
   0x1   :  { %14 = vsyncpa [#allocation6], 0 }
   0x2   :  { %15 = vsyncpa [#allocation9], 0 }
   0x3   :  { %16 = vsyncpa [#allocation4], 0 }
   0x4   :  { %18 = vsyncpa [#allocation4 + $0x1], 0  ;;  %s2909_s27 = smov 0   ;;  %s2911_s28 = smov 0  }
   0x5   :  { %s2913_s29 = smov 0   ;;  %s2915_s30 = smov 0  }
   0x6 LB: > { %s2930_s9 = sadd.s32 4294967295, %s2848_s30   ;;  %s2094_s10 = sadd.s32 4294967294, %s2848_s30   ;;  %s2848_s30 = sphi %s2915_s30, %s3533_s30   ;;  %s2844_s29 = sphi %s2913_s29, %s3532_s29   ;;  %s2840_s28 = sphi %s2911_s28, %s3531_s28   ;;  %s2836_s27 = sphi %s2909_s27, %s3530_s27  }
   0x7   : > { %s2934_s11 = sadd.s32 1, %s2848_s30   ;;  %s204_s12 = sadd.s32 1, %s2844_s29 }
   0x8   : > { %s201_s13 = ssub.s32 %s2848_s30, %s2934_s11  ;;  %p214_p0 = scmp.ne.s32.totalorder %s2844_s29, %s2840_s28 }
   0x9   : > { %p202_p1 = scmp.eq.s32.totalorder %s201_s13, 0  ;;  %p215_p2 = scmp.eq.s32.totalorder %s2930_s9, 1 }
   0xa   : > { %p220_p3 = scmp.ne.s32.totalorder %s2840_s28, %s2836_s27  ;;  %p221_p4 = scmp.eq.s32.totalorder %s2094_s10, 1 }
   0xb   : > { %s2945_s14 = scalar_select %p202_p1, %s2844_s29, %s204_s12  }
   0xc   : > { %p2947_p5 = por %p215_p2, %p214_p0  ;;  %p2951_p6 = por %p221_p4, %p220_p3 }
   0xd   : > { %3517 = sst [smem:[#allocation16_spill]] %s2945_s14  ;;  %p2095_p7 = scmp.ge.s32.totalorder %s2848_s30, 1 }
   0xe   : > { %p228_p8 = scmp.lt.s32.totalorder %s2848_s30, 3  ;;  %p3516_p9 = scmp.eq.s32.totalorder %s2930_s9, 0 }
   0xf   : > { %s2850_s18 = smov [#allocation5]   ;;  %s2851_s21 = smov [#allocation8]  }
  0x10   : > { %p2958_p10 = pnand %p2095_p7, %p228_p8  ;;  %s256_s19 = sshll.u32 %s2850_s18, 4  ;;  %s257_s19 = int_to_ptr.vmem [resolvable:$true] %s256_s19 }
  0x11   : > { %s282_s22 = sshll.u32 %s2851_s21, 4  ;;  %s2657_s24 = scalar_lea.vmem %s257_s19, 3072  ;;  %s283_s22 = int_to_ptr.vmem [resolvable:$true] %s282_s22 }
  0x12   : > { %p2412_p11 = pneg %p2958_p10  ;;  %p2658_p0 = scmp.ne.s32.totalorder %s257_s19, %s2657_s24 }
  0x13   : > { %p2665_p3 = scmp.lt.s32.totalorder %s257_s19, %s257_s19  ;;  %p2666_p4 = scmp.lt.s32.totalorder %s2657_s24, %s2657_s24 }
  0x14   : > { %p2966_p12 = pnand %p3516_p9, %p2412_p11 }
  0x15   : > { %p2667_p7 = por %p2666_p4, %p2665_p3 }
  0x16   : > { %p2972_p13 = pneg %p2966_p12 }
  0x18   : > { %p2660_p1 = pnand %p2658_p0, %p2972_p13 }
  0x1a   : > { %p2661_p2 = pneg %p2660_p1 }
  0x1c   : > { %p2668_p8 = pnand %p2667_p7, %p2661_p2 }
  0x1e   : > { %2671 = shalt.err (!%p2668_p8)
}
  0x1f   : > { %s2852_s25 = smov 192   ;;  %s2853_s26 = smov 12  }
  0x20   : > { %2418 = dma.hbm_to_vmem [thread:$0]  (!%p2966_p12), %s3510_s3, 3072, %s257_s19, [#allocation6], %s2852_s25, %s2852_s25, %s2853_s26  }
  0x21   : > { %s2854_s13 = smov [#allocation2]   ;;  %s2683_s21 = scalar_lea.vmem %s283_s22, 1024 }
  0x22   : > { %s240_s18 = sshll.u32 %s2854_s13, 4  ;;  %p2684_p11 = scmp.ne.s32.totalorder %s283_s22, %s2683_s21  ;;  %s241_s18 = int_to_ptr.vmem [resolvable:$true] %s240_s18 }
  0x23   : > { %p2691_p3 = scmp.lt.s32.totalorder %s283_s22, %s283_s22  ;;  %p2692_p2 = scmp.lt.s32.totalorder %s2683_s21, %s2683_s21 }
  0x24   : > { %p2686_p0 = pnand %p2684_p11, %p2972_p13 }
  0x25   : > { %p2693_p4 = por %p2692_p2, %p2691_p3 }
  0x26   : > { %p2687_p1 = pneg %p2686_p0 }
  0x28   : > { %p2694_p7 = pnand %p2693_p4, %p2687_p1 }
  0x2a   : > { %2697 = shalt.err (!%p2694_p7)
}
  0x2b   : > { %s2855_s24 = smov 64   ;;  %s2856_s14 = smov 4  }
  0x2c   : > { %2424 = dma.hbm_to_vmem [thread:$0]  (!%p2966_p12), %s3512_s5, 1024, %s283_s22, [#allocation9], %s2855_s24, %s2855_s24, %s2856_s14  }
  0x2d   : > { %s2709_s26 = scalar_lea.vmem %s241_s18, 256  ;;  %p2717_p1 = scmp.lt.s32.totalorder %s241_s18, %s241_s18 }
  0x2e   : > { %p2710_p8 = scmp.ne.s32.totalorder %s241_s18, %s2709_s26  ;;  %p2718_p3 = scmp.lt.s32.totalorder %s2709_s26, %s2709_s26 }
  0x30   : > { %p2712_p11 = pnand %p2710_p8, %p2972_p13  ;;  %p2719_p2 = por %p2718_p3, %p2717_p1 }
  0x32   : > { %p2713_p0 = pneg %p2712_p11 }
  0x34   : > { %p2720_p4 = pnand %p2719_p2, %p2713_p0 }
  0x36   : > { %2723 = shalt.err (!%p2720_p4)
}
  0x37   : > { %2415 = dma.hbm_to_vmem [thread:$0]  (!%p2966_p12), %s3508_s1, 256, %s241_s18, [#allocation3], %s2855_s24, %s2855_s24, %s2856_s14  }
  0x38   : > { %s2857_s22 = smov [#allocation7]   ;;  %s2858_s21 = smov [#allocation10]  }
  0x39   : > { %s269_s13 = sshll.u32 %s2857_s22, 4  ;;  %s295_s19 = sshll.u32 %s2858_s21, 4  ;;  %s270_s13 = int_to_ptr.vmem [resolvable:$true] %s269_s13  ;;  %s296_s19 = int_to_ptr.vmem [resolvable:$true] %s295_s19 }
  0x3a   : > { %s2735_s25 = scalar_lea.vmem %s270_s13, 1024  ;;  %p2743_p0 = scmp.lt.s32.totalorder %s270_s13, %s270_s13 }
  0x3b   : > { %p2736_p7 = scmp.ne.s32.totalorder %s270_s13, %s2735_s25  ;;  %p2744_p1 = scmp.lt.s32.totalorder %s2735_s25, %s2735_s25 }
  0x3d   : > { %p2738_p8 = pnand %p2736_p7, %p2972_p13  ;;  %p2745_p3 = por %p2744_p1, %p2743_p0 }
  0x3f   : > { %p2739_p11 = pneg %p2738_p8 }
  0x41   : > { %p2746_p2 = pnand %p2745_p3, %p2739_p11 }
  0x43   : > { %2749 = shalt.err (!%p2746_p2)
}
  0x44   : > { %2421 = dma.hbm_to_vmem [thread:$0]  (!%p2966_p12), %s3511_s4, 1024, %s270_s13, [#allocation6], %s2855_s24, %s2855_s24, %s2856_s14  }
  0x45   : > { %s2761_s10 = scalar_lea.vmem %s296_s19, 1024  ;;  %p2769_p9 = scmp.lt.s32.totalorder %s296_s19, %s296_s19 }
  0x46   : > { %p2762_p4 = scmp.ne.s32.totalorder %s296_s19, %s2761_s10  ;;  %p2770_p0 = scmp.lt.s32.totalorder %s2761_s10, %s2761_s10 }
  0x48   : > { %p2764_p7 = pnand %p2762_p4, %p2972_p13  ;;  %p2771_p11 = por %p2770_p0, %p2769_p9 }
  0x4a   : > { %p2765_p8 = pneg %p2764_p7 }
  0x4c   : > { %p2772_p1 = pnand %p2771_p11, %p2765_p8 }
  0x4e   : > { %2775 = shalt.err (!%p2772_p1)
}
  0x4f   : > { %2427 = dma.hbm_to_vmem [thread:$0]  (!%p2966_p12), %s3513_s6, 1024, %s296_s19, [#allocation9], %s2855_s24, %s2855_s24, %s2856_s14  }
  0x50   : > { %322 = sbr.rel (%p2958_p10) target bundleno = 2323 (0x913), region = 52  ;;  %p3523_p13 = scmp.eq.s32.totalorder (!%p2958_p10), %s2930_s9, 0 }
  0x55   : > { %2819 = dma.done.wait (%p3523_p13), [#allocation3], 256   ;;  %p3524_p3 = pmov %p3523_p13 }
  0x57   : > { %2821 = vsyncadd (%p3524_p3), [#allocation3], 4294967040  ;;  %p3525_p9 = pmov %p3524_p3 }
  0x58   : > { %p3526_p2 = pmov %p3524_p3 }
  0x59   : > { %2823 = dma.done.wait (%p3525_p9), [#allocation6], 4096  }
  0x5a   : > { %2825 = vsyncadd (%p3526_p2), [#allocation6], 4294963200  ;;  %p3527_p4 = pmov %p3526_p2 }
  0x5b   : > { %p3528_p12 = pmov %p3526_p2 }
  0x5c   : > { %2827 = dma.done.wait (%p3527_p4), [#allocation9], 2048  }
  0x5d   : > { %2829 = vsyncadd (%p3528_p12), [#allocation9], 4294965248  ;;  %p372_p10 = scmp.lt.s32.totalorder %s2930_s9, 1  ;;  %v2488_v0 = vld [vmem:[#allocation2 + $0x8] sm:$0xff]   ;;  %v2489_v1 = vld [vmem:[#allocation2] sm:$0xff]   ;;  %vm438_vm0 = vcmask 261120  }
  0x5e   : > { %2250 = vmatprep.subr.bf16.mxu1 %v2488_v0  ;;  %v398_v7 = vld [vmem:[%s3509_s2] sm:$0xff]  ;;  %v399_v11 = vld [vmem:[%s3509_s2 + $0x8] sm:$0xff]  ;;  %v400_v15 = vld [vmem:[%s3509_s2 + $0x10] sm:$0xff]  ;;  %v2859_v61 = vmov 0   ;;  %vm1039_vm1 = vcmask 523264   ;;  %s369_s19 = sand.u32 1, %s2840_s28  }
  0x5f   : > { %s373_s14 = scalar_select %p372_p10, %s2930_s9, 1  ;;  %2251 = vmatpush3.bf16.msra.mxu1 %v2488_v0  ;;  %v401_v18 = vld [vmem:[%s3509_s2 + $0x18] sm:$0xff]  ;;  %v402_v24 = vld [vmem:[%s3509_s2 + $0x20] sm:$0xff]  ;;  %v403_v28 = vld [vmem:[%s3509_s2 + $0x28] sm:$0xff] }
  0x60   : > { %2252 = vmatprep.subr.bf16.mxu1 %v2489_v1  ;;  %v2496_v26 = vld [vmem:[#allocation5 + $0xac] ss:$12 sps:$4 sm:$0xff]   ;;  %v2494_v29 = vld [vmem:[#allocation5 + $0xa8] ss:$12 sps:$4 sm:$0xff]   ;;  %v2497_v33 = vld [vmem:[#allocation5 + $0x90] ss:$12 sps:$4 sm:$0xff]  }
  0x61   : > { %s2178_s17 = sshll.u32 %s373_s14, 5  ;;  %v2499_v32 = vld [vmem:[#allocation5 + $0x94] ss:$12 sps:$4 sm:$0xff]   ;;  %v405_v37 = vld [vmem:[%s3509_s2 + $0x38] sm:$0xff]  ;;  %v2503_v39 = vld [vmem:[#allocation5 + $0xb0] ss:$12 sps:$4 sm:$0xff]  }
  0x62   : > { %s376_s24 = scalar_lea.vmem %s3507_s0, %s2178_s17  ;;  %v404_v35 = vld [vmem:[%s3509_s2 + $0x30] sm:$0xff]  ;;  %v2502_v38 = vld [vmem:[#allocation5 + $0x7c] ss:$12 sps:$4 sm:$0xff]   ;;  %2262 = vmatprep.subr.bf16.mxu0 %v2503_v39  ;;  %v2510_v48 = vld [vmem:[#allocation5 + $0x4c] ss:$12 sps:$4 sm:$0xff]   ;;  %s2108_s26 = sshll.u32 %s369_s19, 6 }
  0x63   : > { %v2490_v2 = vld [vmem:[%s376_s24] sm:$0xff]   ;;  %v2491_v3 = vld [vmem:[%s376_s24 + $0x8] sm:$0xff]   ;;  %v2492_v4 = vld [vmem:[%s376_s24 + $0x10] sm:$0xff]   ;;  %2253 = vmatpush3.bf16.msra.mxu1 %v2489_v1  ;;  %2263 = vmatpush3.bf16.msra.mxu0 %v2503_v39  ;;  %s371_s10 = scalar_lea.vmem [#allocation11], %s2108_s26  ;;  %s2179_s22 = sshll.u32 %s2930_s9, 10 }
  0x64   : > { %2254 = vmatprep.mubr.msk.bf16.mxu1 %vm438_vm0, %v2490_v2  ;;  %v2493_v5 = vld [vmem:[%s376_s24 + $0x18] sm:$0xff]   ;;  %824 = vmatprep.subr.bf16.mxu1 %v2496_v26  ;;  %v2500_v41 = vld [vmem:[#allocation5 + $0x78] ss:$12 sps:$4 sm:$0xff]   ;;  %v2514_v51 = vld [vmem:[#allocation5 + $0x34] ss:$12 sps:$4 sm:$0xff]   ;;  %s1982_s12 = sshll.u32 %s371_s10, 4  ;;  %s3462_s20 = scalar_lea.hbm %s3515_s8, %s2179_s22  ;;  %s3457_s12 = int_to_ptr.vmem [resolvable:$true] %s1982_s12 }
  0x65   : > { %v2506_v43 = vld [vmem:[#allocation5 + $0x64] ss:$12 sps:$4 sm:$0xff]   ;;  %v2504_v46 = vld [vmem:[#allocation5 + $0x60] ss:$12 sps:$4 sm:$0xff]   ;;  %v2508_v50 = vld [vmem:[#allocation5 + $0x48] ss:$12 sps:$4 sm:$0xff]  }
  0x66   : > { %2255 = vmatmul.mubr.msk.bf16.vlgmr.msra.gmra.mxu1 %vm438_vm0, %v2491_v3  ;;  %v2507_v44 = vld [vmem:[#allocation5 + $0x98] ss:$12 sps:$4 sm:$0xff]   ;;  %v2511_v49 = vld [vmem:[#allocation5 + $0x80] ss:$12 sps:$4 sm:$0xff]   ;;  %v2515_v52 = vld [vmem:[#allocation5 + $0x68] ss:$12 sps:$4 sm:$0xff]  }
  0x67   : > { %2258 = vmatprep.mubr.msk.bf16.mxu1 %vm438_vm0, %v2492_v4  ;;  %825 = vmatpush1.bf16.msra.mxu1 %v2494_v29  ;;  %v2512_v53 = vld [vmem:[#allocation5 + $0x30] ss:$12 sps:$4 sm:$0xff]   ;;  %v2516_v56 = vld [vmem:[#allocation5 + $0x18] ss:$12 sps:$4 sm:$0xff]   ;;  %v2520_v59 = vld [vmem:[#allocation5] ss:$12 sps:$4 sm:$0xff]  }
  0x68   : > { %826 = vmatprep.subr.bf16.mxu1 %v2499_v32  ;;  %2264 = vmatprep.subr.bf16.mxu0 %v2507_v44  ;;  %v2518_v54 = vld [vmem:[#allocation5 + $0x1c] ss:$12 sps:$4 sm:$0xff]   ;;  %v2522_v57 = vld [vmem:[#allocation5 + $0x4] ss:$12 sps:$4 sm:$0xff]   ;;  %v2524_v60 = vld [vmem:[#allocation5 + $0x20] ss:$12 sps:$4 sm:$0xff]  }
  0x69   : > { %2265 = vmatpush3.bf16.msra.mxu0 %v2507_v44  ;;  %v2519_v55 = vld [vmem:[#allocation5 + $0x50] ss:$12 sps:$4 sm:$0xff]   ;;  %v2523_v58 = vld [vmem:[#allocation5 + $0x38] ss:$12 sps:$4 sm:$0xff]   ;;  %v2525_v62 = vld [vmem:[#allocation5 + $0x8] ss:$12 sps:$4 sm:$0xff]  }
  0x6a   : > { %2266 = vmatprep.subr.bf16.mxu0 %v2511_v49  ;;  %s3467_s9 = scalar_lea.sflag [#allocation4], %s369_s19  ;;  %s2776_s23 = scalar_lea.vmem %s3457_s12, 1024 }
  0x6b   : > { %827 = vmatpush1.bf16.msra.mxu1 %v2497_v33  ;;  %p2777_p7 = scmp.ne.s32.totalorder %s3457_s12, %s2776_s23  ;;  %s2861_s24 = smov [#allocation11]  }
  0x6c   : > { %828 = vmatprep.subr.bf16.mxu1 %v2502_v38  ;;  %s2780_s13 = sshll.u32 %s2861_s24, 4  ;;  %s2781_s13 = int_to_ptr.vmem [resolvable:$false] %s2780_s13 }
  0x6d   : > { %2267 = vmatpush3.bf16.msra.mxu0 %v2511_v49  ;;  %p2778_p8 = pnand %p2777_p7, %p2947_p5  ;;  %s2782_s21 = scalar_lea.vmem %s2781_s13, 2048 }
  0x6e   : > { %2259 = vmatmul.mubr.msk.bf16.gmra.mxu1 %vm438_vm0, %v2493_v5  ;;  %2268 = vmatprep.subr.bf16.mxu0 %v2515_v52  ;;  %p2783_p11 = scmp.lt.s32.totalorder %s3457_s12, %s2781_s13  ;;  %p2784_p1 = scmp.lt.s32.totalorder %s2782_s21, %s2776_s23 }
  0x6f   : > { %829 = vmatpush1.bf16.msra.mxu1 %v2500_v41  ;;  %856 = vmatprep.mubr.bf16.mxu1 %v2859_v61  ;;  %p2779_p0 = pneg %p2778_p8 }
  0x70   : > { %830 = vmatprep.subr.bf16.mxu1 %v2506_v43  ;;  %p2785_p13 = por %p2784_p1, %p2783_p11 }
  0x71   : > { %2269 = vmatpush3.bf16.msra.mxu0 %v2515_v52 }
  0x72   : > { %2270 = vmatprep.subr.bf16.mxu0 %v2519_v55  ;;  %p2786_p3 = pnand %p2785_p13, %p2779_p0 }
  0x73   : > { %831 = vmatpush1.bf16.msra.mxu1 %v2504_v46 }
  0x74   : > { %832 = vmatprep.subr.bf16.mxu1 %v2510_v48 }
  0x75   : > { %2271 = vmatpush3.bf16.msra.mxu0 %v2519_v55 }
  0x76   : > { %2272 = vmatprep.subr.bf16.mxu0 %v2523_v58 }
  0x77   : > { %833 = vmatpush1.bf16.msra.mxu1 %v2508_v50 }
  0x78   : > { %834 = vmatprep.subr.bf16.mxu1 %v2514_v51 }
  0x79   : > { %2273 = vmatpush3.bf16.msra.mxu0 %v2523_v58 }
  0x7a   : > { %2274 = vmatprep.subr.bf16.mxu0 %v2524_v60 }
  0x7b   : > { %835 = vmatpush1.bf16.msra.mxu1 %v2512_v53 }
  0x7c   : > { %836 = vmatprep.subr.bf16.mxu1 %v2518_v54 }
  0x7d   : > { %2275 = vmatpush3.bf16.msra.mxu0 %v2524_v60 }
  0x7e   : > { %2276 = vmatprep.subr.bf16.mxu0 %v2525_v62 }
  0x7f   : > { %837 = vmatpush1.bf16.msra.mxu1 %v2516_v56  ;;  %v3129_v56 = vld [vmem:[%s3514_s7 + $0x2] ss:$0 sm:$0xff] }
  0x80   : > { %838 = vmatprep.subr.bf16.mxu1 %v2522_v57 }
  0x81   : > { %2277 = vmatpush3.bf16.msra.mxu0 %v2525_v62 }
  0x83   : > { %839 = vmatpush1.bf16.msra.mxu1 %v2520_v59 }
 0x126   : > { %v2256_v6 = vpop.f32.mrf.mxu1 }
 0x127   : > { %v3064_v20 = vadd.f32 %v2256_v6, %v400_v15 }
 0x128   : > { %v485_v8 = vpop.f32.mrf.mxu1 }
 0x129   : > { %v3045_v9 = vadd.f32 %v485_v8, %v398_v7  ;;  %v542_v23 = vmul.f32 %v3064_v20, %v3064_v20 }
 0x12a   : > { %v2257_v10 = vpop.f32.mrf.mxu1 }
 0x12b   : > { %516 = vadd.xlane.f32.xlu0 %v3045_v9  ;;  %v540_v12 = vmul.f32 %v3045_v9, %v3045_v9  ;;  %v3066_v21 = vadd.f32 %v2257_v10, %v401_v18 }
 0x12c   : > { %v488_v13 = vpop.f32.mrf.mxu1 }
 0x12d   : > { %v3053_v14 = vadd.f32 %v488_v13, %v399_v11  ;;  %548 = vadd.xlane.f32.xlu1 %v540_v12  ;;  %v543_v25 = vmul.f32 %v3066_v21, %v3066_v21 }
 0x12e   : > { %v2260_v16 = vpop.f32.mrf.mxu1 }
 0x12f   : > { %518 = vadd.xlane.f32.xlu0 %v3053_v14  ;;  %v541_v17 = vmul.f32 %v3053_v14, %v3053_v14  ;;  %v3096_v40 = vadd.f32 %v2260_v16, %v404_v35 }
 0x130   : > { %v501_v19 = vpop.f32.mrf.mxu1 }
 0x131   : > { %550 = vadd.xlane.f32.xlu1 %v541_v17  ;;  %v3080_v30 = vadd.f32 %v501_v19, %v402_v24  ;;  %v546_v45 = vmul.f32 %v3096_v40, %v3096_v40 }
 0x132   : > { %v2261_v22 = vpop.f32.mrf.mxu1 }
 0x133   : > { %520 = vadd.xlane.f32.xlu0 %v3064_v20  ;;  %v544_v34 = vmul.f32 %v3080_v30, %v3080_v30  ;;  %v3098_v42 = vadd.f32 %v2261_v22, %v405_v37 }
 0x134   : > { %v504_v27 = vpop.f32.mrf.mxu1 }
 0x135   : > { %522 = vadd.xlane.f32.xlu1 %v3066_v21  ;;  %v3082_v31 = vadd.f32 %v504_v27, %v403_v28  ;;  %v547_v47 = vmul.f32 %v3098_v42, %v3098_v42 }
 0x137   : > { %552 = vadd.xlane.f32.xlu0 %v542_v23  ;;  %v545_v36 = vmul.f32 %v3082_v31, %v3082_v31 }
 0x139   : > { %554 = vadd.xlane.f32.xlu1 %v543_v25 }
 0x13b   : > { %524 = vadd.xlane.f32.xlu0 %v3080_v30 }
 0x13d   : > { %526 = vadd.xlane.f32.xlu1 %v3082_v31 }
 0x13f   : > { %556 = vadd.xlane.f32.xlu0 %v544_v34 }
 0x141   : > { %558 = vadd.xlane.f32.xlu1 %v545_v36 }
 0x143   : > { %528 = vadd.xlane.f32.xlu0 %v3096_v40 }
 0x145   : > { %530 = vadd.xlane.f32.xlu1 %v3098_v42 }
 0x147   : > { %560 = vadd.xlane.f32.xlu0 %v546_v45 }
 0x149   : > { %562 = vadd.xlane.f32.xlu1 %v547_v47 }
 0x1b4   : > { %v517_v63 = vpop.xlane.xlu0 %516 }
 0x1b5   : > { %v532_v0 = vmul.f32 0.03125, %v517_v63 }
 0x1b6   : > { %v549_v1 = vpop.xlane.xlu1 %548 }
 0x1b7   : > { %v572_v2 = vmul.f32 %v532_v0, %v532_v0  ;;  %v564_v3 = vmul.f32 0.03125, %v549_v1  ;;  %v596_v46 = vsub.f32 %v3045_v9, %v532_v0 }
 0x1b8   : > { %v519_v4 = vpop.xlane.xlu0 %518 }
 0x1b9   : > { %v580_v5 = vsub.f32 %v564_v3, %v572_v2  ;;  %v533_v6 = vmul.f32 0.03125, %v519_v4 }
 0x1ba   : > { %v551_v7 = vpop.xlane.xlu1 %550 }
 0x1bb   : > { %v588_v8 = vmax.f32 %v580_v5, 0.0  ;;  %v573_v10 = vmul.f32 %v533_v6, %v533_v6  ;;  %v565_v11 = vmul.f32 0.03125, %v551_v7  ;;  %v597_v59 = vsub.f32 %v3053_v14, %v533_v6  ;;  %v381_v6 = vld [vmem:[%s3514_s7 + $0x3] ss:$0 sm:$0xff] }
 0x1bc   : > { %v521_v12 = vpop.xlane.xlu0 %520 }
 0x1bd   : > { %v604_v13 = vadd.f32 1e-05, %v588_v8  ;;  %v581_v15 = vsub.f32 %v565_v11, %v573_v10  ;;  %v3107_v16 = vmul.f32 0.03125, %v521_v12 }
 0x1be   : > { %v523_v17 = vpop.xlane.xlu1 %522 }
 0x1bf   : > { %2550 = vrsqrt.f32 %v604_v13  ;;  %v589_v18 = vmax.f32 %v581_v15, 0.0  ;;  %v3109_v19 = vmul.f32 0.03125, %v523_v17  ;;  %v574_v24 = vmul.f32 %v3107_v16, %v3107_v16 }
 0x1c0   : > { %v553_v22 = vpop.xlane.xlu0 %552  ;;  %v598_v15 = vsub.f32 %v3064_v20, %v3107_v16 }
 0x1c1   : > { %v605_v23 = vadd.f32 1e-05, %v589_v18  ;;  %v566_v25 = vmul.f32 0.03125, %v553_v22  ;;  %v575_v27 = vmul.f32 %v3109_v19, %v3109_v19 }
 0x1c2   : > { %v555_v26 = vpop.xlane.xlu1 %554 }
 0x1c3   : > { %2552 = vrsqrt.f32 %v605_v23  ;;  %v582_v28 = vsub.f32 %v566_v25, %v574_v24  ;;  %v567_v29 = vmul.f32 0.03125, %v555_v26  ;;  %v599_v25 = vsub.f32 %v3066_v21, %v3109_v19 }
 0x1c4   : > { %v525_v32 = vpop.xlane.xlu0 %524 }
 0x1c5   : > { %v590_v33 = vmax.f32 %v582_v28, 0.0  ;;  %v583_v34 = vsub.f32 %v567_v29, %v575_v27  ;;  %v3115_v35 = vmul.f32 0.03125, %v525_v32 }
 0x1c6   : > { %v527_v36 = vpop.xlane.xlu1 %526 }
 0x1c7   : > { %v606_v37 = vadd.f32 1e-05, %v590_v33  ;;  %v591_v38 = vmax.f32 %v583_v34, 0.0  ;;  %v3117_v39 = vmul.f32 0.03125, %v527_v36  ;;  %v576_v44 = vmul.f32 %v3115_v35, %v3115_v35 }
 0x1c8   : > { %v557_v41 = vpop.xlane.xlu0 %556  ;;  %v600_v19 = vsub.f32 %v3080_v30, %v3115_v35 }
 0x1c9   : > { %2554 = vrsqrt.f32 %v606_v37  ;;  %v607_v43 = vadd.f32 1e-05, %v591_v38  ;;  %v568_v45 = vmul.f32 0.03125, %v557_v41  ;;  %v577_v48 = vmul.f32 %v3117_v39, %v3117_v39 }
 0x1ca   : > { %v559_v47 = vpop.xlane.xlu1 %558 }
 0x1cb   : > { %2556 = vrsqrt.f32 %v607_v43  ;;  %v584_v49 = vsub.f32 %v568_v45, %v576_v44  ;;  %v569_v50 = vmul.f32 0.03125, %v559_v47  ;;  %v601_v43 = vsub.f32 %v3082_v31, %v3117_v39 }
 0x1cc   : > { %v2551_v51 = vpop.eup %2550  ;;  %v529_v52 = vpop.xlane.xlu0 %528 }
 0x1cd   : > { %v592_v53 = vmax.f32 %v584_v49, 0.0  ;;  %v585_v54 = vsub.f32 %v569_v50, %v577_v48  ;;  %v3124_v55 = vmul.f32 0.03125, %v529_v52  ;;  %v620_v57 = vmul.f32 %v2551_v51, %v596_v46 }
 0x1ce   : > { %v531_v58 = vpop.xlane.xlu1 %530 }
 0x1cf   : > { %v608_v60 = vadd.f32 1e-05, %v592_v53  ;;  %v593_v62 = vmax.f32 %v585_v54, 0.0  ;;  %v578_v0 = vmul.f32 %v3124_v55, %v3124_v55  ;;  %v539_v1 = vmul.f32 0.03125, %v531_v58 }
 0x1d0   : > { %v2553_v63 = vpop.eup %2552  ;;  %v561_v2 = vpop.xlane.xlu0 %560  ;;  %v628_v3 = vmul.f32 %v620_v57, %v3129_v56  ;;  %v602_v35 = vsub.f32 %v3096_v40, %v3124_v55 }
 0x1d1   : > { %2558 = vrsqrt.f32 %v608_v60  ;;  %v609_v4 = vadd.f32 1e-05, %v593_v62  ;;  %v570_v5 = vmul.f32 0.03125, %v561_v2  ;;  %v621_v7 = vmul.f32 %v2553_v63, %v597_v59 }
 0x1d2   : > { %v579_v8 = vmul.f32 %v539_v1, %v539_v1  ;;  %v563_v10 = vpop.xlane.xlu1 %562  ;;  %v636_v22 = vadd.f32 %v628_v3, %v381_v6  ;;  %v603_v39 = vsub.f32 %v3098_v42, %v539_v1  ;;  %v378_v3 = vld [vmem:[%s3514_s7] ss:$8 sm:$0x7] }
 0x1d3   : > { %2560 = vrsqrt.f32 %v609_v4  ;;  %v586_v11 = vsub.f32 %v570_v5, %v578_v0  ;;  %v571_v12 = vmul.f32 0.03125, %v563_v10  ;;  %v629_v13 = vmul.f32 %v621_v7, %v3129_v56 }
 0x1d4   : > { %v681_v0 = vlaneseq }
 0x1d5   : > { %v594_v17 = vmax.f32 %v586_v11, 0.0  ;;  %v587_v18 = vsub.f32 %v571_v12, %v579_v8  ;;  %v637_v23 = vadd.f32 %v629_v13, %v381_v6 }
 0x1d6   : > { %v2555_v24 = vpop.eup %2554  ;;  %v682_v2 = vshrl.u32 %v681_v0, 7 }
 0x1d7   : > { %v610_v26 = vadd.f32 1e-05, %v594_v17  ;;  %v595_v27 = vmax.f32 %v587_v18, 0.0  ;;  %v644_v28 = vpack.c.bf16 %v637_v23, %v636_v22  ;;  %v622_v29 = vmul.f32 %v2555_v24, %v598_v15 }
 0x1d8   : > { %v2557_v32 = vpop.eup %2556  ;;  %v683_v1 = vsub.s32 0, %v682_v2 }
 0x1d9   : > { %2562 = vrsqrt.f32 %v610_v26  ;;  %v611_v33 = vadd.f32 1e-05, %v595_v27  ;;  %857 = vmatmul.mubr.bf16.vlgmr.msra.gmra.mxu1 %v644_v28  ;;  %2278 = vmatprep.mubr.bf16.mxu0 %v644_v28  ;;  %v623_v34 = vmul.f32 %v2557_v32, %v599_v25  ;;  %v630_v16 = vmul.f32 %v622_v29, %v3129_v56 }
 0x1da   : > { %866 = vmatprep.mubr.bf16.mxu1 %v2859_v61  ;;  %v3162_v5 = vrot.slane %v378_v3, %v683_v1  ;;  %v691_v28 = vsub.s32 2, %v682_v2  ;;  %v687_v29 = vsub.s32 1, %v682_v2 }
 0x1db   : > { %2564 = vrsqrt.f32 %v611_v33  ;;  %v631_v36 = vmul.f32 %v623_v34, %v3129_v56  ;;  %v638_v37 = vadd.f32 %v630_v16, %v381_v6 }
 0x1dd   : > { %v639_v38 = vadd.f32 %v631_v36, %v381_v6  ;;  %v692_v36 = vrot.slane %v378_v3, %v691_v28 }
 0x1de   : > { %v2559_v41 = vpop.eup %2558 }
 0x1df   : > { %v645_v44 = vpack.c.bf16 %v639_v38, %v638_v37  ;;  %v624_v45 = vmul.f32 %v2559_v41, %v600_v19  ;;  %v688_v19 = vrot.slane %v378_v3, %v687_v29 }
 0x1e0   : > { %v2561_v46 = vpop.eup %2560 }
 0x1e1   : > { %867 = vmatmul.mubr.bf16.gmra.mxu1 %v645_v44  ;;  %2279 = vmatmul.mubr.bf16.vlgmr.msra.gmra.mxu0 %v645_v44  ;;  %v625_v47 = vmul.f32 %v2561_v46, %v601_v43  ;;  %v632_v48 = vmul.f32 %v624_v45, %v3129_v56 }
 0x1e2   : > { %876 = vmatprep.mubr.bf16.mxu1 %v2859_v61 }
 0x1e3   : > { %v633_v49 = vmul.f32 %v625_v47, %v3129_v56  ;;  %v640_v50 = vadd.f32 %v632_v48, %v381_v6 }
 0x1e5   : > { %v641_v51 = vadd.f32 %v633_v49, %v381_v6 }
 0x1e6   : > { %v2563_v52 = vpop.eup %2562 }
 0x1e7   : > { %v646_v53 = vpack.c.bf16 %v641_v51, %v640_v50  ;;  %v626_v54 = vmul.f32 %v2563_v52, %v602_v35 }
 0x1e8   : > { %v2565_v57 = vpop.eup %2564 }
 0x1e9   : > { %877 = vmatmul.mubr.bf16.gmra.mxu1 %v646_v53  ;;  %2282 = vmatprep.mubr.bf16.mxu0 %v646_v53  ;;  %v627_v58 = vmul.f32 %v2565_v57, %v603_v39  ;;  %v634_v59 = vmul.f32 %v626_v54, %v3129_v56 }
 0x1ea   : > { %886 = vmatprep.mubr.bf16.mxu1 %v2859_v61 }
 0x1eb   : > { %v635_v60 = vmul.f32 %v627_v58, %v3129_v56  ;;  %v642_v62 = vadd.f32 %v634_v59, %v381_v6 }
 0x1ed   : > { %v643_v63 = vadd.f32 %v635_v60, %v381_v6 }
 0x1ef   : > { %v647_v55 = vpack.c.bf16 %v643_v63, %v642_v62 }
 0x1f1   : > { %887 = vmatmul.mubr.bf16.gmra.mxu1 %v647_v55  ;;  %2283 = vmatmul.mubr.bf16.gmra.mxu0 %v647_v55 }
 0x299   : > { %v858_v4 = vpop.f32.mrf.mxu1 }
 0x29a   : > { %v859_v56 = vadd.f32 %v858_v4, %v3162_v5 }
 0x29b   : > { %v3164_v7 = vpop.f32.mrf.mxu1 }
 0x29c   : > { %v861_v1 = vadd.f32 %v3164_v7, %v688_v19 }
 0x29d   : > { %v862_v61 = vpop.f32.mrf.mxu1 }
 0x29e   : > { %v863_v8 = vadd.f32 %v862_v61, %v3162_v5 }
 0x29f   : > { %v864_v10 = vpop.f32.mrf.mxu1 }
 0x2a0   : > { %v962_v6 = vpack.c.bf16 %v863_v8, %v859_v56  ;;  %v865_v2 = vadd.f32 %v864_v10, %v688_v19 }
 0x2a1   : > { %v3168_v11 = vpop.f32.mrf.mxu1  ;;  %v2280_v12 = vpop.f32.mrf.mxu0 }
 0x2a2   : > { %2294 = vmatprep.mubr.bf16.mxu1 %v962_v6  ;;  %v940_v54 = vadd.f32 %v2280_v12, %v692_v36  ;;  %v963_v3 = vpack.c.bf16 %v865_v2, %v861_v1  ;;  %v869_v56 = vadd.f32 %v3168_v11, %v3162_v5 }
 0x2a3   : > { %v870_v13 = vpop.f32.mrf.mxu1  ;;  %v931_v17 = vpop.f32.mrf.mxu0 }
 0x2a4   : > { %v932_v60 = vadd.f32 %v931_v17, %v692_v36  ;;  %v871_v63 = vadd.f32 %v870_v13, %v688_v19 }
 0x2a5   : > { %v872_v15 = vpop.f32.mrf.mxu1  ;;  %v2281_v23 = vpop.f32.mrf.mxu0 }
 0x2a6   : > { %v943_v51 = vadd.f32 %v2281_v23, %v692_v36  ;;  %v873_v4 = vadd.f32 %v872_v15, %v3162_v5 }
 0x2a7   : > { %v874_v18 = vpop.f32.mrf.mxu1  ;;  %v934_v26 = vpop.f32.mrf.mxu0 }
 0x2a8   : > { %v967_v58 = vpack.c.bf16 %v943_v51, %v940_v54  ;;  %v935_v59 = vadd.f32 %v934_v26, %v692_v36  ;;  %v875_v62 = vadd.f32 %v874_v18, %v688_v19  ;;  %v965_v6 = vpack.c.bf16 %v873_v4, %v869_v56 }
 0x2a9   : > { %v878_v22 = vpop.f32.mrf.mxu1 }
 0x2aa   : > { %v964_v55 = vpack.c.bf16 %v935_v59, %v932_v60  ;;  %v966_v0 = vpack.c.bf16 %v875_v62, %v871_v63  ;;  %v879_v8 = vadd.f32 %v878_v22, %v3162_v5 }
 0x2ab   : > { %v880_v24 = vpop.f32.mrf.mxu1 }
 0x2ac   : > { %v881_v52 = vadd.f32 %v880_v24, %v688_v19 }
 0x2ad   : > { %v882_v25 = vpop.f32.mrf.mxu1 }
 0x2ae   : > { %v883_v61 = vadd.f32 %v882_v25, %v3162_v5 }
 0x2af   : > { %v884_v27 = vpop.f32.mrf.mxu1 }
 0x2b0   : > { %v885_v44 = vadd.f32 %v884_v27, %v688_v19  ;;  %v968_v12 = vpack.c.bf16 %v883_v61, %v879_v8 }
 0x2b1   : > { %v888_v32 = vpop.f32.mrf.mxu1  ;;  %v2284_v33 = vpop.f32.mrf.mxu0 }
 0x2b2   : > { %v956_v41 = vadd.f32 %v2284_v33, %v692_v36  ;;  %v969_v57 = vpack.c.bf16 %v885_v44, %v881_v52  ;;  %v889_v7 = vadd.f32 %v888_v32, %v3162_v5 }
 0x2b3   : > { %v890_v34 = vpop.f32.mrf.mxu1  ;;  %v947_v16 = vpop.f32.mrf.mxu0 }
 0x2b4   : > { %v891_v45 = vadd.f32 %v890_v34, %v688_v19  ;;  %v948_v48 = vadd.f32 %v947_v16, %v692_v36 }
 0x2b5   : > { %v892_v37 = vpop.f32.mrf.mxu1  ;;  %v2285_v38 = vpop.f32.mrf.mxu0 }
 0x2b6   : > { %v959_v43 = vadd.f32 %v2285_v38, %v692_v36  ;;  %v893_v10 = vadd.f32 %v892_v37, %v3162_v5 }
 0x2b7   : > { %v894_v46 = vpop.f32.mrf.mxu1  ;;  %v950_v47 = vpop.f32.mrf.mxu0 }
 0x2b8   : > { %v973_v49 = vpack.c.bf16 %v959_v43, %v956_v41  ;;  %v895_v35 = vadd.f32 %v894_v46, %v688_v19  ;;  %v951_v50 = vadd.f32 %v950_v47, %v692_v36  ;;  %v971_v13 = vpack.c.bf16 %v893_v10, %v889_v7 }
 0x2ba   : > { %v972_v39 = vpack.c.bf16 %v895_v35, %v891_v45  ;;  %v970_v53 = vpack.c.bf16 %v951_v50, %v948_v48  ;;  %2302 = vmatprep.subr.bf16.mxu0 %v973_v49 }
 0x2bb   : > { %2303 = vmatpush3.bf16.msra.mxu0 %v973_v49 }
 0x2bc   : > { %2286 = vmatprep.subr.bf16.mxu1 %v972_v39  ;;  %2304 = vmatprep.subr.bf16.mxu0 %v970_v53 }
 0x2bd   : > { %2287 = vmatpush3.bf16.xpose.msra.mxu1 %v972_v39 }
 0x2be   : > { %2288 = vmatprep.subr.bf16.mxu1 %v969_v57 }
 0x2bf   : > { %2305 = vmatpush3.bf16.msra.mxu0 %v970_v53 }
 0x2c0   : > { %2306 = vmatprep.subr.bf16.mxu0 %v967_v58 }
 0x2c3   : > { %2307 = vmatpush3.bf16.msra.mxu0 %v967_v58 }
 0x2c4   : > { %2308 = vmatprep.subr.bf16.mxu0 %v964_v55 }
 0x2c5   : > { %2289 = vmatpush3.bf16.xpose.msra.mxu1 %v969_v57 }
 0x2c6   : > { %2290 = vmatprep.subr.bf16.mxu1 %v966_v0 }
 0x2c7   : > { %2309 = vmatpush3.bf16.msra.mxu0 %v964_v55 }
 0x2cd   : > { %2291 = vmatpush3.bf16.xpose.msra.mxu1 %v966_v0 }
 0x2ce   : > { %2292 = vmatprep.subr.bf16.mxu1 %v963_v3 }
 0x2d5   : > { %2293 = vmatpush3.bf16.xpose.msra.mxu1 %v963_v3 }
 0x2dc   : > { %2295 = vmatmul.mubr.bf16.vlgmr.msra.gmra.mxu1 %v965_v6 }
 0x2dd   : > { %2298 = vmatprep.mubr.bf16.mxu1 %v968_v12 }
 0x2e4   : > { %2299 = vmatmul.mubr.bf16.gmra.mxu1 %v971_v13 }
 0x39c   : > { %v2296_v17 = vpop.f32.mrf.mxu1 }
 0x39d   : > { %v1046_v22 = vsel %vm1039_vm1, %v2296_v17, -inf }
 0x39e   : > { %v1008_v18 = vpop.f32.mrf.mxu1 }
 0x39f   : > { %v1040_v15 = vsel %vm1039_vm1, %v1008_v18, -inf }
 0x3a0   : > { %1041 = vmax.xlane.f32.xlu0 %v1040_v15  ;;  %v2297_v23 = vpop.f32.mrf.mxu1 }
 0x3a1   : > { %v1049_v5 = vsel %vm1039_vm1, %v2297_v23, -inf }
 0x3a2   : > { %v1011_v11 = vpop.f32.mrf.mxu1 }
 0x3a3   : > { %v1043_v24 = vsel %vm1039_vm1, %v1011_v11, -inf }
 0x3a4   : > { %1047 = vmax.xlane.f32.xlu0 %v1046_v22  ;;  %1044 = vmax.xlane.f32.xlu1 %v1043_v24  ;;  %v2300_v25 = vpop.f32.mrf.mxu1 }
 0x3a5   : > { %v1058_v32 = vsel %vm1039_vm1, %v2300_v25, -inf }
 0x3a6   : > { %v1024_v26 = vpop.f32.mrf.mxu1 }
 0x3a7   : > { %v1052_v27 = vsel %vm1039_vm1, %v1024_v26, -inf }
 0x3a8   : > { %1050 = vmax.xlane.f32.xlu1 %v1049_v5  ;;  %1053 = vmax.xlane.f32.xlu0 %v1052_v27  ;;  %v2301_v28 = vpop.f32.mrf.mxu1 }
 0x3a9   : > { %v1061_v34 = vsel %vm1039_vm1, %v2301_v28, -inf }
 0x3aa   : > { %v1027_v29 = vpop.f32.mrf.mxu1 }
 0x3ab   : > { %v1055_v33 = vsel %vm1039_vm1, %v1027_v29, -inf }
 0x3ac   : > { %1059 = vmax.xlane.f32.xlu0 %v1058_v32  ;;  %1056 = vmax.xlane.f32.xlu1 %v1055_v33 }
 0x3b0   : > { %1062 = vmax.xlane.f32.xlu1 %v1061_v34 }
 0x429   : > { %v1042_v16 = vpop.xlane.xlu0 %1041 }
 0x42a   : > { %v1064_v36 = vsub.f32 %v1008_v18, %v1042_v16 }
 0x42c   : > { %v1072_v19 = vmul.f32 1.442695, %v1064_v36 }
 0x42d   : > { %v1048_v37 = vpop.xlane.xlu0 %1047  ;;  %v1045_v38 = vpop.xlane.xlu1 %1044 }
 0x42e   : > { %2566 = vpow2.f32 %v1072_v19  ;;  %v1066_v41 = vsub.f32 %v2296_v17, %v1048_v37  ;;  %v1065_v43 = vsub.f32 %v1011_v11, %v1045_v38  ;;  %v2526_v17 = vld [vmem:[#allocation7 + $0x38] sm:$0xff]   ;;  %v2527_v38 = vld [vmem:[#allocation7 + $0x30] sm:$0xff]  }
 0x42f   : > { %2318 = vmatprep.subr.bf16.mxu0 %v2526_v17 }
 0x430   : > { %v1076_v44 = vmul.f32 1.442695, %v1066_v41  ;;  %v1074_v45 = vmul.f32 1.442695, %v1065_v43 }
 0x431   : > { %v1051_v46 = vpop.xlane.xlu1 %1050  ;;  %v1054_v47 = vpop.xlane.xlu0 %1053 }
 0x432   : > { %2568 = vpow2.f32 %v1076_v44  ;;  %v1067_v48 = vsub.f32 %v2297_v23, %v1051_v46  ;;  %v1068_v49 = vsub.f32 %v1024_v26, %v1054_v47 }
 0x433   : > { %2570 = vpow2.f32 %v1074_v45 }
 0x434   : > { %v1078_v35 = vmul.f32 1.442695, %v1067_v48  ;;  %v1080_v50 = vmul.f32 1.442695, %v1068_v49  ;;  %v2528_v48 = vld [vmem:[#allocation7 + $0x28] sm:$0xff]  }
 0x435   : > { %v1060_v51 = vpop.xlane.xlu0 %1059  ;;  %v1057_v52 = vpop.xlane.xlu1 %1056 }
 0x436   : > { %2572 = vpow2.f32 %v1078_v35  ;;  %v1070_v39 = vsub.f32 %v2300_v25, %v1060_v51  ;;  %v1069_v53 = vsub.f32 %v1027_v29, %v1057_v52  ;;  %v2529_v51 = vld [vmem:[#allocation7 + $0x20] sm:$0xff]   ;;  %v2530_v52 = vld [vmem:[#allocation7 + $0x18] sm:$0xff]  }
 0x437   : > { %2574 = vpow2.f32 %v1080_v50 }
 0x438   : > { %v1084_v54 = vmul.f32 1.442695, %v1070_v39  ;;  %v1082_v57 = vmul.f32 1.442695, %v1069_v53  ;;  %v2531_v39 = vld [vmem:[#allocation7 + $0x10] sm:$0xff]   ;;  %v2532_v53 = vld [vmem:[#allocation7 + $0x8] sm:$0xff]  }
 0x439   : > { %v1063_v58 = vpop.xlane.xlu1 %1062 }
 0x43a   : > { %2576 = vpow2.f32 %v1084_v54  ;;  %v1071_v59 = vsub.f32 %v2301_v28, %v1063_v58  ;;  %v2533_v54 = vld [vmem:[#allocation7] sm:$0xff]  }
 0x43b   : > { %v2567_v60 = vpop.eup %2566  ;;  %2578 = vpow2.f32 %v1082_v57 }
 0x43c   : > { %v1086_v62 = vmul.f32 1.442695, %v1071_v59  ;;  %v1088_v63 = vsel %vm1039_vm1, %v2567_v60, 0.0 }
 0x43d   : > { %1089 = vadd.xlane.f32.xlu0 %v1088_v63 }
 0x43e   : > { %2580 = vpow2.f32 %v1086_v62 }
 0x43f   : > { %v2569_v55 = vpop.eup %2568 }
 0x440   : > { %v2571_v0 = vpop.eup %2570  ;;  %v1094_v2 = vsel %vm1039_vm1, %v2569_v55, 0.0 }
 0x441   : > { %1095 = vadd.xlane.f32.xlu0 %v1094_v2  ;;  %v1091_v1 = vsel %vm1039_vm1, %v2571_v0, 0.0 }
 0x442   : > { %1092 = vadd.xlane.f32.xlu1 %v1091_v1 }
 0x443   : > { %v2573_v3 = vpop.eup %2572 }
 0x444   : > { %v2575_v4 = vpop.eup %2574  ;;  %v1097_v61 = vsel %vm1039_vm1, %v2573_v3, 0.0 }
 0x445   : > { %v1100_v56 = vsel %vm1039_vm1, %v2575_v4, 0.0 }
 0x446   : > { %1101 = vadd.xlane.f32.xlu0 %v1100_v56  ;;  %1098 = vadd.xlane.f32.xlu1 %v1097_v61  ;;  %v384_v61 = vld [vmem:[%s3514_s7 + $0x6] ss:$0 sm:$0xff] }
 0x447   : > { %v2577_v8 = vpop.eup %2576 }
 0x448   : > { %v2579_v6 = vpop.eup %2578  ;;  %v1106_v12 = vsel %vm1039_vm1, %v2577_v8, 0.0 }
 0x449   : > { %v1103_v10 = vsel %vm1039_vm1, %v2579_v6, 0.0 }
 0x44a   : > { %1107 = vadd.xlane.f32.xlu0 %v1106_v12  ;;  %1104 = vadd.xlane.f32.xlu1 %v1103_v10 }
 0x44b   : > { %v2581_v7 = vpop.eup %2580 }
 0x44c   : > { %v1109_v13 = vsel %vm1039_vm1, %v2581_v7, 0.0 }
 0x44e   : > { %1110 = vadd.xlane.f32.xlu1 %v1109_v13 }
 0x4c6   : > { %v1090_v18 = vpop.xlane.xlu0 %1089 }
 0x4c7   : > { %2582 = vrcp.f32 %v1090_v18 }
 0x4ca   : > { %v1096_v15 = vpop.xlane.xlu0 %1095 }
 0x4cb   : > { %v1093_v23 = vpop.xlane.xlu1 %1092 }
 0x4cc   : > { %2584 = vrcp.f32 %v1093_v23 }
 0x4cd   : > { %2586 = vrcp.f32 %v1096_v15 }
 0x4cf   : > { %v1102_v11 = vpop.xlane.xlu0 %1101  ;;  %v1099_v22 = vpop.xlane.xlu1 %1098 }
 0x4d0   : > { %2588 = vrcp.f32 %v1099_v22 }
 0x4d1   : > { %2590 = vrcp.f32 %v1102_v11 }
 0x4d3   : > { %v1108_v24 = vpop.xlane.xlu0 %1107  ;;  %v1105_v25 = vpop.xlane.xlu1 %1104 }
 0x4d4   : > { %2592 = vrcp.f32 %v1105_v25  ;;  %v2583_v26 = vpop.eup %2582 }
 0x4d5   : > { %2594 = vrcp.f32 %v1108_v24  ;;  %v1120_v28 = vmul.f32 %v2583_v26, %v2567_v60 }
 0x4d7   : > { %v1111_v5 = vpop.xlane.xlu1 %1110 }
 0x4d8   : > { %2596 = vrcp.f32 %v1111_v5 }
 0x4d9   : > { %v2585_v27 = vpop.eup %2584 }
 0x4da   : > { %v1121_v29 = vmul.f32 %v2585_v27, %v2571_v0  ;;  %v2587_v32 = vpop.eup %2586 }
 0x4db   : > { %v1122_v16 = vmul.f32 %v2587_v32, %v2569_v55 }
 0x4dc   : > { %v1128_v33 = vpack.c.bf16 %v1121_v29, %v1120_v28 }
 0x4dd   : > { %v2589_v34 = vpop.eup %2588 }
 0x4de   : > { %2310 = vmatprep.mubr.msk.bf16.mxu0 %vm1039_vm1, %v1128_v33  ;;  %v1123_v36 = vmul.f32 %v2589_v34, %v2573_v3  ;;  %v2591_v19 = vpop.eup %2590 }
 0x4df   : > { %v1124_v44 = vmul.f32 %v2591_v19, %v2575_v4  ;;  %v2535_v19 = vld [vmem:[#allocation8 + $0x30] sm:$0xff]  }
 0x4e0   : > { %v1129_v37 = vpack.c.bf16 %v1123_v36, %v1122_v16  ;;  %v2534_v36 = vld [vmem:[#allocation8 + $0x38] sm:$0xff]  }
 0x4e1   : > { %v2593_v41 = vpop.eup %2592  ;;  %2342 = vmatprep.subr.bf16.mxu1 %v2534_v36 }
 0x4e2   : > { %v2595_v43 = vpop.eup %2594  ;;  %2311 = vmatmul.mubr.msk.bf16.vlgmr.msra.gmra.mxu0 %vm1039_vm1, %v1129_v37  ;;  %v1125_v45 = vmul.f32 %v2593_v41, %v2579_v6  ;;  %2343 = vmatpush3.bf16.msra.mxu1 %v2534_v36  ;;  %v2536_v37 = vld [vmem:[#allocation8 + $0x28] sm:$0xff]   ;;  %v2538_v41 = vld [vmem:[#allocation8 + $0x18] sm:$0xff]  }
 0x4e3   : > { %2319 = vmatpush3.bf16.msra.mxu0 %v2526_v17  ;;  %v1126_v49 = vmul.f32 %v2595_v43, %v2577_v8  ;;  %2344 = vmatprep.subr.bf16.mxu1 %v2535_v19  ;;  %v2539_v43 = vld [vmem:[#allocation8 + $0x10] sm:$0xff]  }
 0x4e4   : > { %v1130_v47 = vpack.c.bf16 %v1125_v45, %v1124_v44  ;;  %2320 = vmatprep.subr.bf16.mxu0 %v2527_v38  ;;  %v2540_v44 = vld [vmem:[#allocation8 + $0x8] sm:$0xff]   ;;  %v2541_v45 = vld [vmem:[#allocation8] sm:$0xff]  }
 0x4e5   : > { %v2597_v46 = vpop.eup %2596 }
 0x4e6   : > { %v1127_v35 = vmul.f32 %v2597_v46, %v2581_v7  ;;  %2314 = vmatprep.mubr.msk.bf16.mxu0 %vm1039_vm1, %v1130_v47  ;;  %2345 = vmatpush3.bf16.msra.mxu1 %v2535_v19 }
 0x4e7   : > { %2321 = vmatpush3.bf16.msra.mxu0 %v2527_v38  ;;  %2346 = vmatprep.subr.bf16.mxu1 %v2536_v37  ;;  %v2537_v38 = vld [vmem:[#allocation8 + $0x20] sm:$0xff]  }
 0x4e8   : > { %v1131_v50 = vpack.c.bf16 %v1127_v35, %v1126_v49  ;;  %2322 = vmatprep.subr.bf16.mxu0 %v2528_v48 }
 0x4ea   : > { %2315 = vmatmul.mubr.msk.bf16.gmra.mxu0 %vm1039_vm1, %v1131_v50  ;;  %2347 = vmatpush3.bf16.msra.mxu1 %v2536_v37 }
 0x4eb   : > { %2323 = vmatpush3.bf16.msra.mxu0 %v2528_v48  ;;  %2348 = vmatprep.subr.bf16.mxu1 %v2537_v38 }
 0x4ec   : > { %2324 = vmatprep.subr.bf16.mxu0 %v2529_v51 }
 0x4ee   : > { %2349 = vmatpush3.bf16.msra.mxu1 %v2537_v38 }
 0x4ef   : > { %2325 = vmatpush3.bf16.msra.mxu0 %v2529_v51  ;;  %2350 = vmatprep.subr.bf16.mxu1 %v2538_v41 }
 0x4f0   : > { %2326 = vmatprep.subr.bf16.mxu0 %v2530_v52 }
 0x4f2   : > { %2351 = vmatpush3.bf16.msra.mxu1 %v2538_v41 }
 0x4f3   : > { %2327 = vmatpush3.bf16.msra.mxu0 %v2530_v52  ;;  %2352 = vmatprep.subr.bf16.mxu1 %v2539_v43 }
 0x4f4   : > { %2328 = vmatprep.subr.bf16.mxu0 %v2531_v39 }
 0x4f6   : > { %2353 = vmatpush3.bf16.msra.mxu1 %v2539_v43 }
 0x4f7   : > { %2329 = vmatpush3.bf16.msra.mxu0 %v2531_v39  ;;  %2354 = vmatprep.subr.bf16.mxu1 %v2540_v44 }
 0x4f8   : > { %2330 = vmatprep.subr.bf16.mxu0 %v2532_v53 }
 0x4fa   : > { %2355 = vmatpush3.bf16.msra.mxu1 %v2540_v44 }
 0x4fb   : > { %2331 = vmatpush3.bf16.msra.mxu0 %v2532_v53  ;;  %2356 = vmatprep.subr.bf16.mxu1 %v2541_v45 }
 0x4fc   : > { %2332 = vmatprep.subr.bf16.mxu0 %v2533_v54 }
 0x4fe   : > { %2357 = vmatpush3.bf16.msra.mxu1 %v2541_v45 }
 0x4ff   : > { %2333 = vmatpush3.bf16.msra.mxu0 %v2533_v54 }
 0x5a2   : > { %v2312_v57 = vpop.f32.mrf.mxu0 }
 0x5a4   : > { %v1178_v58 = vpop.f32.mrf.mxu0 }
 0x5a6   : > { %v2313_v59 = vpop.f32.mrf.mxu0 }
 0x5a7   : > { %v1210_v63 = vpack.c.bf16 %v2313_v59, %v2312_v57 }
 0x5a8   : > { %v1181_v60 = vpop.f32.mrf.mxu0 }
 0x5a9   : > { %v1209_v62 = vpack.c.bf16 %v1181_v60, %v1178_v58 }
 0x5aa   : > { %v2316_v55 = vpop.f32.mrf.mxu0 }
 0x5ab   : > { %2334 = vmatprep.mubr.bf16.mxu0 %v1209_v62 }
 0x5ac   : > { %v1194_v0 = vpop.f32.mrf.mxu0  ;;  %2335 = vmatmul.mubr.bf16.vlgmr.msra.gmra.mxu0 %v1210_v63 }
 0x5ae   : > { %v2317_v2 = vpop.f32.mrf.mxu0 }
 0x5af   : > { %v1212_v4 = vpack.c.bf16 %v2317_v2, %v2316_v55 }
 0x5b0   : > { %v1197_v1 = vpop.f32.mrf.mxu0 }
 0x5b1   : > { %v1211_v3 = vpack.c.bf16 %v1197_v1, %v1194_v0 }
 0x5b3   : > { %2338 = vmatprep.mubr.bf16.mxu0 %v1211_v3 }
 0x5b4   : > { %2339 = vmatmul.mubr.bf16.gmra.mxu0 %v1212_v4 }
 0x66c   : > { %v2336_v56 = vpop.f32.mrf.mxu0 }
 0x66d   : > { %v1320_v8 = vadd.f32 %v2336_v56, %v384_v61 }
 0x66e   : > { %v1311_v6 = vpop.f32.mrf.mxu0 }
 0x66f   : > { %v3202_v12 = vadd.f32 %v1320_v8, %v3064_v20  ;;  %v1312_v10 = vadd.f32 %v1311_v6, %v384_v61 }
 0x670   : > { %v2337_v7 = vpop.f32.mrf.mxu0 }
 0x671   : > { %v1323_v13 = vadd.f32 %v2337_v7, %v384_v61  ;;  %1354 = vadd.xlane.f32.xlu0 %v3202_v12  ;;  %v3206_v18 = vadd.f32 %v1312_v10, %v3045_v9  ;;  %v1376_v22 = vmul.f32 %v3202_v12, %v3202_v12 }
 0x672   : > { %v1314_v17 = vpop.f32.mrf.mxu0 }
 0x673   : > { %v3209_v15 = vadd.f32 %v1323_v13, %v3066_v21  ;;  %v1315_v23 = vadd.f32 %v1314_v17, %v384_v61  ;;  %v1374_v25 = vmul.f32 %v3206_v18, %v3206_v18 }
 0x674   : > { %v2340_v11 = vpop.f32.mrf.mxu0 }
 0x675   : > { %1356 = vadd.xlane.f32.xlu1 %v3209_v15  ;;  %1350 = vadd.xlane.f32.xlu0 %v3206_v18  ;;  %v3214_v20 = vadd.f32 %v1315_v23, %v3053_v14  ;;  %v1336_v9 = vadd.f32 %v2340_v11, %v384_v61  ;;  %v1377_v21 = vmul.f32 %v3209_v15, %v3209_v15 }
 0x676   : > { %v1327_v24 = vpop.f32.mrf.mxu0 }
 0x677   : > { %v3224_v14 = vadd.f32 %v1336_v9, %v3096_v40  ;;  %v1328_v5 = vadd.f32 %v1327_v24, %v384_v61  ;;  %v1375_v28 = vmul.f32 %v3214_v20, %v3214_v20 }
 0x678   : > { %v2341_v26 = vpop.f32.mrf.mxu0 }
 0x679   : > { %1352 = vadd.xlane.f32.xlu1 %v3214_v20  ;;  %1386 = vadd.xlane.f32.xlu0 %v1376_v22  ;;  %v1339_v27 = vadd.f32 %v2341_v26, %v384_v61  ;;  %v3230_v32 = vadd.f32 %v1328_v5, %v3080_v30 }
 0x67a   : > { %v1330_v29 = vpop.f32.mrf.mxu0 }
 0x67b   : > { %v3233_v33 = vadd.f32 %v1339_v27, %v3098_v42  ;;  %v1331_v34 = vadd.f32 %v1330_v29, %v384_v61  ;;  %v1378_v16 = vmul.f32 %v3230_v32, %v3230_v32  ;;  %v1380_v42 = vmul.f32 %v3224_v14, %v3224_v14 }
 0x67d   : > { %1388 = vadd.xlane.f32.xlu1 %v1377_v21  ;;  %1382 = vadd.xlane.f32.xlu0 %v1374_v25  ;;  %v3238_v40 = vadd.f32 %v1331_v34, %v3082_v31  ;;  %v1381_v31 = vmul.f32 %v3233_v33, %v3233_v33 }
 0x67f   : > { %v1379_v30 = vmul.f32 %v3238_v40, %v3238_v40 }
 0x681   : > { %1384 = vadd.xlane.f32.xlu1 %v1375_v28  ;;  %1362 = vadd.xlane.f32.xlu0 %v3224_v14 }
 0x685   : > { %1364 = vadd.xlane.f32.xlu1 %v3233_v33  ;;  %1358 = vadd.xlane.f32.xlu0 %v3230_v32 }
 0x689   : > { %1360 = vadd.xlane.f32.xlu1 %v3238_v40  ;;  %1390 = vadd.xlane.f32.xlu0 %v1378_v16 }
 0x68d   : > { %1392 = vadd.xlane.f32.xlu1 %v1379_v30  ;;  %1394 = vadd.xlane.f32.xlu0 %v1380_v42 }
 0x691   : > { %1396 = vadd.xlane.f32.xlu1 %v1381_v31 }
 0x6fa   : > { %v1355_v46 = vpop.xlane.xlu0 %1354 }
 0x6fb   : > { %v3249_v49 = vmul.f32 0.03125, %v1355_v46 }
 0x6fd   : > { %v1408_v39 = vmul.f32 %v3249_v49, %v3249_v49 }
 0x6fe   : > { %v1357_v47 = vpop.xlane.xlu1 %1356  ;;  %v1351_v48 = vpop.xlane.xlu0 %1350 }
 0x6ff   : > { %v3251_v35 = vmul.f32 0.03125, %v1357_v47  ;;  %v3253_v50 = vmul.f32 0.03125, %v1351_v48 }
 0x701   : > { %v1409_v57 = vmul.f32 %v3251_v35, %v3251_v35  ;;  %v1406_v58 = vmul.f32 %v3253_v50, %v3253_v50  ;;  %v1433_v44 = vsub.f32 %v3209_v15, %v3251_v35 }
 0x702   : > { %v1353_v51 = vpop.xlane.xlu1 %1352  ;;  %v1387_v52 = vpop.xlane.xlu0 %1386 }
 0x703   : > { %v1400_v53 = vmul.f32 0.03125, %v1387_v52  ;;  %v3261_v62 = vmul.f32 0.03125, %v1353_v51 }
 0x705   : > { %v1416_v54 = vsub.f32 %v1400_v53, %v1408_v39  ;;  %v1407_v56 = vmul.f32 %v3261_v62, %v3261_v62  ;;  %v1432_v53 = vsub.f32 %v3202_v12, %v3249_v49 }
 0x706   : > { %v1389_v59 = vpop.xlane.xlu1 %1388  ;;  %v1383_v60 = vpop.xlane.xlu0 %1382 }
 0x707   : > { %v1424_v63 = vmax.f32 %v1416_v54, 0.0  ;;  %v1401_v55 = vmul.f32 0.03125, %v1389_v59  ;;  %v1398_v0 = vmul.f32 0.03125, %v1383_v60  ;;  %v1430_v54 = vsub.f32 %v3206_v18, %v3253_v50 }
 0x709   : > { %v1417_v2 = vsub.f32 %v1401_v55, %v1409_v57  ;;  %v1414_v1 = vsub.f32 %v1398_v0, %v1406_v58  ;;  %v1440_v3 = vadd.f32 1e-05, %v1424_v63  ;;  %v1431_v0 = vsub.f32 %v3214_v20, %v3261_v62 }
 0x70a   : > { %v1385_v4 = vpop.xlane.xlu1 %1384  ;;  %v1363_v61 = vpop.xlane.xlu0 %1362 }
 0x70b   : > { %v1425_v8 = vmax.f32 %v1417_v2, 0.0  ;;  %v1422_v6 = vmax.f32 %v1414_v1, 0.0  ;;  %v1399_v10 = vmul.f32 0.03125, %v1385_v4  ;;  %2598 = vrsqrt.f32 %v1440_v3  ;;  %v382_v1 = vld [vmem:[%s3514_s7 + $0x4] ss:$0 sm:$0xff] }
 0x70c   : > { %v3267_v21 = vmul.f32 0.03125, %v1363_v61 }
 0x70d   : > { %v1441_v7 = vadd.f32 1e-05, %v1425_v8  ;;  %v1438_v13 = vadd.f32 1e-05, %v1422_v6  ;;  %v1415_v17 = vsub.f32 %v1399_v10, %v1407_v56  ;;  %v383_v8 = vld [vmem:[%s3514_s7 + $0x5] ss:$0 sm:$0xff] }
 0x70e   : > { %v1365_v23 = vpop.xlane.xlu1 %1364  ;;  %v1359_v11 = vpop.xlane.xlu0 %1358  ;;  %v1412_v34 = vmul.f32 %v3267_v21, %v3267_v21 }
 0x70f   : > { %2600 = vrsqrt.f32 %v1441_v7  ;;  %v1423_v22 = vmax.f32 %v1415_v17, 0.0  ;;  %v3265_v24 = vmul.f32 0.03125, %v1359_v11  ;;  %v3273_v16 = vmul.f32 0.03125, %v1365_v23 }
 0x710   : > { %2602 = vrsqrt.f32 %v1438_v13 }
 0x711   : > { %v1439_v9 = vadd.f32 1e-05, %v1423_v22  ;;  %v1410_v5 = vmul.f32 %v3265_v24, %v3265_v24  ;;  %v1413_v45 = vmul.f32 %v3273_v16, %v3273_v16  ;;  %v1434_v17 = vsub.f32 %v3230_v32, %v3265_v24 }
 0x712   : > { %v1361_v25 = vpop.xlane.xlu1 %1360  ;;  %v1391_v26 = vpop.xlane.xlu0 %1390 }
 0x713   : > { %2604 = vrsqrt.f32 %v1439_v9  ;;  %v1371_v27 = vmul.f32 0.03125, %v1361_v25  ;;  %v1402_v28 = vmul.f32 0.03125, %v1391_v26 }
 0x715   : > { %v1418_v29 = vsub.f32 %v1402_v28, %v1410_v5  ;;  %v1411_v42 = vmul.f32 %v1371_v27, %v1371_v27  ;;  %v1435_v25 = vsub.f32 %v3238_v40, %v1371_v27  ;;  %v1436_v5 = vsub.f32 %v3224_v14, %v3267_v21  ;;  %v2542_v21 = vld [vmem:[#allocation10 + $0x38] sm:$0xff]  }
 0x716   : > { %v1393_v36 = vpop.xlane.xlu1 %1392  ;;  %v1395_v30 = vpop.xlane.xlu0 %1394  ;;  %2366 = vmatprep.subr.bf16.mxu0 %v2542_v21 }
 0x717   : > { %v1426_v19 = vmax.f32 %v1418_v29, 0.0  ;;  %v1403_v31 = vmul.f32 0.03125, %v1393_v36  ;;  %v1404_v37 = vmul.f32 0.03125, %v1395_v30  ;;  %v1437_v30 = vsub.f32 %v3233_v33, %v3273_v16  ;;  %2367 = vmatpush3.bf16.msra.mxu0 %v2542_v21  ;;  %v2544_v16 = vld [vmem:[#allocation10 + $0x28] sm:$0xff]  }
 0x718   : > { %v2599_v47 = vpop.eup %2598 }
 0x719   : > { %v1442_v38 = vadd.f32 1e-05, %v1426_v19  ;;  %v1419_v41 = vsub.f32 %v1403_v31, %v1411_v42  ;;  %v1420_v43 = vsub.f32 %v1404_v37, %v1412_v34  ;;  %v1456_v55 = vmul.f32 %v2599_v47, %v1432_v53  ;;  %v2545_v47 = vld [vmem:[#allocation10 + $0x20] sm:$0xff]   ;;  %v379_v53 = vld [vmem:[%s3514_s7 + $0x1] ss:$0 sm:$0xff] }
 0x71a   : > { %v1397_v46 = vpop.xlane.xlu1 %1396 }
 0x71b   : > { %2606 = vrsqrt.f32 %v1442_v38  ;;  %v1427_v48 = vmax.f32 %v1419_v41, 0.0  ;;  %v1428_v51 = vmax.f32 %v1420_v43, 0.0  ;;  %v1405_v52 = vmul.f32 0.03125, %v1397_v46  ;;  %v2543_v46 = vld [vmem:[#allocation10 + $0x30] sm:$0xff]  }
 0x71c   : > { %v2601_v39 = vpop.eup %2600  ;;  %v1464_v56 = vmul.f32 %v1456_v55, %v382_v1  ;;  %2368 = vmatprep.subr.bf16.mxu0 %v2543_v46 }
 0x71d   : > { %v2603_v57 = vpop.eup %2602  ;;  %v1443_v58 = vadd.f32 1e-05, %v1427_v48  ;;  %v1444_v59 = vadd.f32 1e-05, %v1428_v51  ;;  %v1421_v35 = vsub.f32 %v1405_v52, %v1413_v45  ;;  %v1457_v60 = vmul.f32 %v2601_v39, %v1433_v44  ;;  %2369 = vmatpush3.bf16.msra.mxu0 %v2543_v46  ;;  %v2546_v48 = vld [vmem:[#allocation10 + $0x18] sm:$0xff]   ;;  %v2547_v51 = vld [vmem:[#allocation10 + $0x10] sm:$0xff]  }
 0x71e   : > { %v1454_v63 = vmul.f32 %v2603_v57, %v1430_v54  ;;  %v1472_v13 = vadd.f32 %v1464_v56, %v383_v8  ;;  %2370 = vmatprep.subr.bf16.mxu0 %v2544_v16  ;;  %v2548_v52 = vld [vmem:[#allocation10 + $0x8] sm:$0xff]   ;;  %v2549_v39 = vld [vmem:[#allocation10] sm:$0xff]  }
 0x71f   : > { %2608 = vrsqrt.f32 %v1443_v58  ;;  %v1429_v2 = vmax.f32 %v1421_v35, 0.0  ;;  %v1465_v3 = vmul.f32 %v1457_v60, %v382_v1 }
 0x720   : > { %v2605_v49 = vpop.eup %2604  ;;  %2610 = vrsqrt.f32 %v1444_v59  ;;  %v1462_v61 = vmul.f32 %v1454_v63, %v382_v1 }
 0x721   : > { %v1445_v50 = vadd.f32 1e-05, %v1429_v2  ;;  %v1455_v4 = vmul.f32 %v2605_v49, %v1431_v0  ;;  %v1473_v62 = vadd.f32 %v1465_v3, %v383_v8  ;;  %2371 = vmatpush3.bf16.msra.mxu0 %v2544_v16 }
 0x722   : > { %v1470_v10 = vadd.f32 %v1462_v61, %v383_v8  ;;  %2372 = vmatprep.subr.bf16.mxu0 %v2545_v47 }
 0x723   : > { %2612 = vrsqrt.f32 %v1445_v50  ;;  %v1463_v6 = vmul.f32 %v1455_v4, %v382_v1  ;;  %v1479_v22 = vpack.c.bf16 %v1473_v62, %v1472_v13 }
 0x725   : > { %v1471_v7 = vadd.f32 %v1463_v6, %v383_v8  ;;  %2373 = vmatpush3.bf16.msra.mxu0 %v2545_v47 }
 0x726   : > { %2374 = vmatprep.subr.bf16.mxu0 %v2546_v48 }
 0x727   : > { %v1478_v23 = vpack.c.bf16 %v1471_v7, %v1470_v10 }
 0x728   : > { %v2607_v11 = vpop.eup %2606 }
 0x729   : > { %2358 = vmatprep.mubr.bf16.mxu1 %v1478_v23  ;;  %v1458_v9 = vmul.f32 %v2607_v11, %v1434_v17  ;;  %2375 = vmatpush3.bf16.msra.mxu0 %v2546_v48 }
 0x72a   : > { %2359 = vmatmul.mubr.bf16.vlgmr.msra.gmra.mxu1 %v1479_v22  ;;  %2376 = vmatprep.subr.bf16.mxu0 %v2547_v51 }
 0x72b   : > { %v1466_v34 = vmul.f32 %v1458_v9, %v382_v1 }
 0x72c   : > { %v2609_v26 = vpop.eup %2608 }
 0x72d   : > { %v2611_v28 = vpop.eup %2610  ;;  %v1459_v29 = vmul.f32 %v2609_v26, %v1435_v25  ;;  %v1474_v19 = vadd.f32 %v1466_v34, %v383_v8  ;;  %2377 = vmatpush3.bf16.msra.mxu0 %v2547_v51 }
 0x72e   : > { %v1460_v36 = vmul.f32 %v2611_v28, %v1436_v5  ;;  %2378 = vmatprep.subr.bf16.mxu0 %v2548_v52 }
 0x72f   : > { %v1467_v24 = vmul.f32 %v1459_v29, %v382_v1 }
 0x730   : > { %v2613_v42 = vpop.eup %2612  ;;  %v1468_v38 = vmul.f32 %v1460_v36, %v382_v1 }
 0x731   : > { %v1475_v31 = vadd.f32 %v1467_v24, %v383_v8  ;;  %v1461_v37 = vmul.f32 %v2613_v42, %v1437_v30  ;;  %2379 = vmatpush3.bf16.msra.mxu0 %v2548_v52 }
 0x732   : > { %v1476_v27 = vadd.f32 %v1468_v38, %v383_v8  ;;  %2380 = vmatprep.subr.bf16.mxu0 %v2549_v39 }
 0x733   : > { %v1480_v41 = vpack.c.bf16 %v1475_v31, %v1474_v19  ;;  %v1469_v43 = vmul.f32 %v1461_v37, %v382_v1 }
 0x735   : > { %2362 = vmatprep.mubr.bf16.mxu1 %v1480_v41  ;;  %v1477_v44 = vadd.f32 %v1469_v43, %v383_v8  ;;  %2381 = vmatpush3.bf16.msra.mxu0 %v2549_v39 }
 0x737   : > { %v1481_v45 = vpack.c.bf16 %v1477_v44, %v1476_v27 }
 0x739   : > { %2363 = vmatmul.mubr.bf16.gmra.mxu1 %v1481_v45 }
 0x7ea   : > { %v2360_v54 = vpop.f32.mrf.mxu1 }
 0x7eb   : > { %v3301_v57 = vadd.f32 %v2360_v54, %v379_v53 }
 0x7ec   : > { %v1580_v58 = vpop.f32.mrf.mxu1 }
 0x7ed   : > { %v3304_v59 = vmul.f32 0.70710677, %v3301_v57  ;;  %v3306_v35 = vadd.f32 %v1580_v58, %v379_v53 }
 0x7ee   : > { %v2361_v60 = vpop.f32.mrf.mxu1 }
 0x7ef   : > { %v1645_v63 = vand.u32 2147483647, %v3304_v59  ;;  %v3310_v55 = vmul.f32 0.70710677, %v3306_v35  ;;  %v3312_v0 = vadd.f32 %v2361_v60, %v379_v53  ;;  %vm1629_vm2 = vcmp.ge.f32.partialorder %v3304_v59, 0.0 }
 0x7f0   : > { %v1583_v2 = vpop.f32.mrf.mxu1 }
 0x7f1   : > { %v1653_v1 = vmul.f32 0.3275911, %v1645_v63  ;;  %v1643_v49 = vand.u32 2147483647, %v3310_v55  ;;  %v3316_v3 = vmul.f32 0.70710677, %v3312_v0  ;;  %v3318_v50 = vadd.f32 %v1583_v2, %v379_v53 }
 0x7f2   : > { %v1749_v9 = vsub.f32 0.0, %v1645_v63  ;;  %vm1627_vm3 = vcmp.ge.f32.partialorder %v3310_v55, 0.0 }
 0x7f3   : > { %v1661_v4 = vadd.f32 1.0, %v1653_v1  ;;  %v1651_v61 = vmul.f32 0.3275911, %v1643_v49  ;;  %v1646_v56 = vand.u32 2147483647, %v3316_v3  ;;  %v1747_v5 = vsub.f32 0.0, %v1643_v49 }
 0x7f4   : > { %v3322_v8 = vmul.f32 0.70710677, %v3318_v50  ;;  %v1757_v42 = vmul.f32 %v1749_v9, %v1645_v63  ;;  %vm1630_vm4 = vcmp.ge.f32.partialorder %v3316_v3, 0.0 }
 0x7f5   : > { %2614 = vrcp.f32 %v1661_v4  ;;  %v1659_v6 = vadd.f32 1.0, %v1651_v61  ;;  %v1654_v62 = vmul.f32 0.3275911, %v1646_v56  ;;  %v1750_v29 = vsub.f32 0.0, %v1646_v56 }
 0x7f6   : > { %v1644_v10 = vand.u32 2147483647, %v3322_v8  ;;  %v1755_v37 = vmul.f32 %v1747_v5, %v1643_v49  ;;  %v1767_v47 = vmul.f32 1.442695, %v1757_v42  ;;  %vm1628_vm5 = vcmp.ge.f32.partialorder %v3322_v8, 0.0 }
 0x7f7   : > { %2616 = vrcp.f32 %v1659_v6  ;;  %v1662_v7 = vadd.f32 1.0, %v1654_v62  ;;  %v1758_v43 = vmul.f32 %v1750_v29, %v1646_v56  ;;  %v2860_v56 = vmov -1.0  }
 0x7f8   : > { %v1652_v13 = vmul.f32 0.3275911, %v1644_v10  ;;  %v1748_v46 = vsub.f32 0.0, %v1644_v10  ;;  %v1763_v39 = vmul.f32 1.442695, %v1755_v37  ;;  %v3365_v6 = vsel %vm1629_vm2, 1.0, %v2860_v56 }
 0x7f9   : > { %v2364_v17 = vpop.f32.mrf.mxu1  ;;  %2618 = vrcp.f32 %v1662_v7  ;;  %v1769_v58 = vmul.f32 1.442695, %v1758_v43  ;;  %v1613_v8 = vmul.f32 0.5, %v3301_v57 }
 0x7fa   : > { %v3325_v23 = vadd.f32 %v2364_v17, %v379_v53  ;;  %v1660_v11 = vadd.f32 1.0, %v1652_v13  ;;  %v1756_v1 = vmul.f32 %v1748_v46, %v1644_v10 }
 0x7fb   : > { %v1596_v22 = vpop.f32.mrf.mxu1 }
 0x7fc   : > { %v3328_v25 = vmul.f32 0.70710677, %v3325_v23  ;;  %v3330_v26 = vadd.f32 %v1596_v22, %v379_v53  ;;  %2620 = vrcp.f32 %v1660_v11  ;;  %v1765_v59 = vmul.f32 1.442695, %v1756_v1 }
 0x7fd   : > { %v2365_v28 = vpop.f32.mrf.mxu1 }
 0x7fe   : > { %v1649_v34 = vand.u32 2147483647, %v3328_v25  ;;  %v3334_v36 = vmul.f32 0.70710677, %v3330_v26  ;;  %v3336_v30 = vadd.f32 %v2365_v28, %v379_v53  ;;  %vm1633_vm8 = vcmp.ge.f32.partialorder %v3328_v25, 0.0 }
 0x7ff   : > { %v1599_v24 = vpop.f32.mrf.mxu1 }
 0x800   : > { %v1657_v19 = vmul.f32 0.3275911, %v1649_v34  ;;  %v1647_v31 = vand.u32 2147483647, %v3334_v36  ;;  %v3340_v38 = vmul.f32 0.70710677, %v3336_v30  ;;  %v3344_v45 = vadd.f32 %v1599_v24, %v379_v53 }
 0x801   : > { %v1753_v7 = vsub.f32 0.0, %v1649_v34  ;;  %vm1631_vm7 = vcmp.ge.f32.partialorder %v3334_v36, 0.0 }
 0x802   : > { %v3342_v41 = vpop.eup %2614  ;;  %v1665_v27 = vadd.f32 1.0, %v1657_v19  ;;  %v1655_v44 = vmul.f32 0.3275911, %v1647_v31  ;;  %v3348_v16 = vand.u32 2147483647, %v3340_v38  ;;  %v1751_v29 = vsub.f32 0.0, %v1647_v31 }
 0x803   : > { %v1677_v21 = vmul.f32 1.0614054, %v3342_v41  ;;  %v3356_v60 = vmul.f32 0.70710677, %v3344_v45  ;;  %v1761_v37 = vmul.f32 %v1753_v7, %v1649_v34  ;;  %vm1634_vm6 = vcmp.ge.f32.partialorder %v3340_v38, 0.0 }
 0x804   : > { %2622 = vrcp.f32 %v1665_v27  ;;  %v1663_v48 = vadd.f32 1.0, %v1655_v44  ;;  %v3351_v51 = vpop.eup %2616  ;;  %v1658_v54 = vmul.f32 0.3275911, %v3348_v16 }
 0x805   : > { %v1685_v52 = vadd.f32 -1.4531521, %v1677_v21  ;;  %v1675_v53 = vmul.f32 1.0614054, %v3351_v51  ;;  %v3371_v11 = vand.u32 2147483647, %v3356_v60 }
 0x806   : > { %v3358_v63 = vpop.eup %2618  ;;  %2624 = vrcp.f32 %v1663_v48  ;;  %v1666_v49 = vadd.f32 1.0, %v1658_v54  ;;  %vm1632_vm9 = vcmp.ge.f32.partialorder %v3356_v60, 0.0  ;;  %v1617_v60 = vmul.f32 0.5, %v3325_v23 }
 0x807   : > { %v1693_v2 = vmul.f32 %v3342_v41, %v1685_v52  ;;  %2626 = vpow2.f32 %v1767_v47  ;;  %v1683_v4 = vadd.f32 -1.4531521, %v1675_v53  ;;  %v1678_v61 = vmul.f32 1.0614054, %v3358_v63 }
 0x808   : > { %2628 = vrcp.f32 %v1666_v49  ;;  %v1656_v24 = vmul.f32 0.3275911, %v3371_v11  ;;  %v1754_v47 = vsub.f32 0.0, %v3348_v16 }
 0x809   : > { %v1701_v62 = vadd.f32 1.4214138, %v1693_v2  ;;  %v3367_v13 = vpop.eup %2620  ;;  %v1691_v17 = vmul.f32 %v3351_v51, %v1683_v4  ;;  %2630 = vpow2.f32 %v1763_v39  ;;  %v1686_v10 = vadd.f32 -1.4531521, %v1678_v61 }
 0x80a   : > { %2632 = vpow2.f32 %v1769_v58  ;;  %v1676_v9 = vmul.f32 1.0614054, %v3367_v13  ;;  %v1664_v44 = vadd.f32 1.0, %v1656_v24  ;;  %v1759_v39 = vmul.f32 %v1751_v29, %v1647_v31 }
 0x80b   : > { %v1709_v22 = vmul.f32 %v3342_v41, %v1701_v62  ;;  %v1699_v5 = vadd.f32 1.4214138, %v1691_v17  ;;  %v1694_v28 = vmul.f32 %v3358_v63, %v1686_v10  ;;  %2634 = vpow2.f32 %v1765_v59 }
 0x80c   : > { %v1684_v19 = vadd.f32 -1.4531521, %v1676_v9  ;;  %2636 = vrcp.f32 %v1664_v44  ;;  %v1775_v58 = vmul.f32 1.442695, %v1761_v37  ;;  %v1635_v2 = vsel %vm1627_vm3, 1.0, %v2860_v56 }
 0x80d   : > { %v1717_v42 = vadd.f32 -0.28449672, %v1709_v22  ;;  %v1707_v43 = vmul.f32 %v3351_v51, %v1699_v5  ;;  %v1702_v27 = vadd.f32 1.4214138, %v1694_v28  ;;  %v1638_v31 = vsel %vm1630_vm4, 1.0, %v2860_v56 }
 0x80e   : > { %v1692_v46 = vmul.f32 %v3367_v13, %v1684_v19  ;;  %v1762_v7 = vmul.f32 %v1754_v47, %v3348_v16  ;;  %v1771_v9 = vmul.f32 1.442695, %v1759_v39  ;;  %2638 = vpow2.f32 %v1775_v58 }
 0x80f   : > { %v1725_v21 = vmul.f32 %v3342_v41, %v1717_v42  ;;  %v1715_v48 = vadd.f32 -0.28449672, %v1707_v43  ;;  %v1710_v52 = vmul.f32 %v3358_v63, %v1702_v27  ;;  %v1752_v28 = vsub.f32 0.0, %v3371_v11 }
 0x810   : > { %v1700_v53 = vadd.f32 1.4214138, %v1692_v46  ;;  %v1777_v44 = vmul.f32 1.442695, %v1762_v7  ;;  %2640 = vpow2.f32 %v1771_v9 }
 0x811   : > { %v3384_v54 = vpop.eup %2622  ;;  %v1733_v34 = vadd.f32 0.2548296, %v1725_v21  ;;  %v1723_v1 = vmul.f32 %v3351_v51, %v1715_v48  ;;  %v1718_v49 = vadd.f32 -0.28449672, %v1710_v52 }
 0x812   : > { %v1681_v4 = vmul.f32 1.0614054, %v3384_v54  ;;  %v1708_v62 = vmul.f32 %v3367_v13, %v1700_v53  ;;  %2642 = vpow2.f32 %v1777_v44 }
 0x813   : > { %v1741_v61 = vmul.f32 %v3342_v41, %v1733_v34  ;;  %v3397_v17 = vpop.eup %2624  ;;  %v1731_v10 = vadd.f32 0.2548296, %v1723_v1  ;;  %v1726_v55 = vmul.f32 %v3358_v63, %v1718_v49  ;;  %v1760_v34 = vmul.f32 %v1752_v28, %v3371_v11 }
 0x814   : > { %v1689_v22 = vadd.f32 -1.4531521, %v1681_v4  ;;  %v2627_v59 = vpop.eup %2626  ;;  %v1716_v5 = vadd.f32 -0.28449672, %v1708_v62  ;;  %v1679_v41 = vmul.f32 1.0614054, %v3397_v17 }
 0x815   : > { %v3402_v3 = vpop.eup %2628  ;;  %v1781_v29 = vmul.f32 %v2627_v59, %v1741_v61  ;;  %v1739_v24 = vmul.f32 %v3351_v51, %v1731_v10  ;;  %v1734_v16 = vadd.f32 0.2548296, %v1726_v55 }
 0x816   : > { %v1697_v42 = vmul.f32 %v3384_v54, %v1689_v22  ;;  %v2631_v19 = vpop.eup %2630  ;;  %v1724_v37 = vmul.f32 %v3367_v13, %v1716_v5  ;;  %v1687_v43 = vadd.f32 -1.4531521, %v1679_v41  ;;  %v1682_v27 = vmul.f32 1.0614054, %v3402_v3 }
 0x817   : > { %v2633_v21 = vpop.eup %2632  ;;  %v1779_v46 = vmul.f32 %v2631_v19, %v1739_v24  ;;  %v1742_v47 = vmul.f32 %v3358_v63, %v1734_v16  ;;  %v1789_v53 = vsub.f32 1.0, %v1781_v29  ;;  %v1773_v5 = vmul.f32 1.442695, %v1760_v34 }
 0x818   : > { %v1705_v48 = vadd.f32 1.4214138, %v1697_v42  ;;  %v1732_v52 = vadd.f32 0.2548296, %v1724_v37  ;;  %v1695_v39 = vmul.f32 %v3397_v17, %v1687_v43  ;;  %v1690_v51 = vadd.f32 -1.4531521, %v1682_v27  ;;  %v2635_v63 = vpop.eup %2634 }
 0x819   : > { %v1787_v58 = vsub.f32 1.0, %v1779_v46  ;;  %v1782_v1 = vmul.f32 %v2633_v21, %v1742_v47  ;;  %v2637_v22 = vpop.eup %2636  ;;  %v1797_v41 = vmul.f32 %v1789_v53, %v3365_v6  ;;  %v1611_v24 = vmul.f32 0.5, %v3306_v35 }
 0x81a   : > { %v1713_v49 = vmul.f32 %v3384_v54, %v1705_v48  ;;  %v1740_v4 = vmul.f32 %v3367_v13, %v1732_v52  ;;  %v1703_v61 = vadd.f32 1.4214138, %v1695_v39  ;;  %v1698_v62 = vmul.f32 %v3402_v3, %v1690_v51 }
 0x81b   : > { %v1795_v7 = vmul.f32 %v1787_v58, %v1635_v2  ;;  %v1790_v10 = vsub.f32 1.0, %v1782_v1  ;;  %v1680_v29 = vmul.f32 1.0614054, %v2637_v22  ;;  %v1636_v43 = vsel %vm1628_vm5, 1.0, %v2860_v56  ;;  %v2639_v46 = vpop.eup %2638 }
 0x81c   : > { %v1721_v55 = vadd.f32 -0.28449672, %v1713_v49  ;;  %v1780_v9 = vmul.f32 %v2635_v63, %v1740_v4  ;;  %v1711_v11 = vmul.f32 %v3397_v17, %v1703_v61  ;;  %v1706_v59 = vadd.f32 1.4214138, %v1698_v62 }
 0x81d   : > { %v1798_v28 = vmul.f32 %v1790_v10, %v1638_v31  ;;  %v1803_v19 = vadd.f32 1.0, %v1795_v7  ;;  %v1688_v27 = vadd.f32 -1.4531521, %v1680_v29  ;;  %v1805_v47 = vadd.f32 1.0, %v1797_v41  ;;  %v2641_v49 = vpop.eup %2640 }
 0x81e   : > { %v1729_v13 = vmul.f32 %v3384_v54, %v1721_v55  ;;  %v1788_v16 = vsub.f32 1.0, %v1780_v9  ;;  %v1719_v2 = vadd.f32 -0.28449672, %v1711_v11  ;;  %v1714_v42 = vmul.f32 %v3402_v3, %v1706_v59 }
 0x81f   : > { %v1806_v37 = vadd.f32 1.0, %v1798_v28  ;;  %v1614_v35 = vmul.f32 0.5, %v3312_v0  ;;  %v1696_v48 = vmul.f32 %v2637_v22, %v1688_v27  ;;  %2644 = vpow2.f32 %v1773_v5  ;;  %v2643_v55 = vpop.eup %2642 }
 0x820   : > { %v1796_v44 = vmul.f32 %v1788_v16, %v1636_v43  ;;  %v1737_v21 = vadd.f32 0.2548296, %v1729_v13  ;;  %v1727_v6 = vmul.f32 %v3397_v17, %v1719_v2  ;;  %v1722_v31 = vadd.f32 -0.28449672, %v1714_v42 }
 0x821   : > { %v1612_v52 = vmul.f32 0.5, %v3318_v50  ;;  %v1811_v53 = vmul.f32 %v1803_v19, %v1611_v24  ;;  %v1814_v58 = vmul.f32 %v1806_v37, %v1614_v35  ;;  %v1704_v1 = vadd.f32 1.4214138, %v1696_v48 }
 0x822   : > { %v1804_v39 = vadd.f32 1.0, %v1796_v44  ;;  %v1735_v51 = vadd.f32 0.2548296, %v1727_v6  ;;  %v1730_v34 = vmul.f32 %v3402_v3, %v1722_v31  ;;  %v1745_v61 = vmul.f32 %v3384_v54, %v1737_v21 }
 0x823   : > { %v1813_v63 = vmul.f32 %v1805_v47, %v1613_v8  ;;  %v1712_v7 = vmul.f32 %v2637_v22, %v1704_v1  ;;  %v1642_v13 = vsel %vm1634_vm6, 1.0, %v2860_v56  ;;  %v1639_v16 = vsel %vm1631_vm7, 1.0, %v2860_v56 }
 0x824   : > { %v1812_v4 = vmul.f32 %v1804_v39, %v1612_v52  ;;  %v1743_v62 = vmul.f32 %v3397_v17, %v1735_v51  ;;  %v1738_v0 = vadd.f32 0.2548296, %v1730_v34  ;;  %v1785_v57 = vmul.f32 %v2639_v46, %v1745_v61 }
 0x825   : > { %v1820_v9 = vpack.c.bf16 %v1814_v58, %v1813_v63  ;;  %v1720_v59 = vadd.f32 -0.28449672, %v1712_v7  ;;  %v1641_v42 = vsel %vm1633_vm8, 1.0, %v2860_v56  ;;  %v1640_v27 = vsel %vm1632_vm9, 1.0, %v2860_v56 }
 0x826   : > { %v1746_v50 = vmul.f32 %v3402_v3, %v1738_v0  ;;  %v1819_v10 = vpack.c.bf16 %v1812_v4, %v1811_v53  ;;  %v1783_v11 = vmul.f32 %v2641_v49, %v1743_v62  ;;  %v1793_v3 = vsub.f32 1.0, %v1785_v57 }
 0x827   : > { %v1728_v41 = vmul.f32 %v2637_v22, %v1720_v59  ;;  %v1615_v6 = vmul.f32 0.5, %v3330_v26  ;;  %v1616_v31 = vmul.f32 0.5, %v3344_v45 }
 0x828   : > { %v1786_v5 = vmul.f32 %v2643_v55, %v1746_v50  ;;  %2382 = vmatprep.mubr.bf16.mxu0 %v1819_v10  ;;  %v1791_v17 = vsub.f32 1.0, %v1783_v11  ;;  %v1801_v37 = vmul.f32 %v1793_v3, %v1641_v42 }
 0x829   : > { %2383 = vmatmul.mubr.bf16.vlgmr.msra.gmra.mxu0 %v1820_v9  ;;  %v1736_v28 = vadd.f32 0.2548296, %v1728_v41 }
 0x82a   : > { %v1794_v54 = vsub.f32 1.0, %v1786_v5  ;;  %v1799_v19 = vmul.f32 %v1791_v17, %v1639_v16  ;;  %v1809_v21 = vadd.f32 1.0, %v1801_v37 }
 0x82b   : > { %v1744_v29 = vmul.f32 %v2637_v22, %v1736_v28  ;;  %v1618_v22 = vmul.f32 0.5, %v3336_v30  ;;  %v385_v30 = vld [vmem:[%s3514_s7 + $0x7] ss:$0 sm:$0xff] }
 0x82c   : > { %v2645_v24 = vpop.eup %2644  ;;  %v1802_v2 = vmul.f32 %v1794_v54, %v1642_v13  ;;  %v1807_v25 = vadd.f32 1.0, %v1799_v19  ;;  %v1817_v52 = vmul.f32 %v1809_v21, %v1617_v60 }
 0x82d   : > { %v1784_v38 = vmul.f32 %v2645_v24, %v1744_v29 }
 0x82e   : > { %v1810_v43 = vadd.f32 1.0, %v1802_v2  ;;  %v1815_v35 = vmul.f32 %v1807_v25, %v1615_v6 }
 0x82f   : > { %v1792_v36 = vsub.f32 1.0, %v1784_v38 }
 0x830   : > { %v1818_v47 = vmul.f32 %v1810_v43, %v1618_v22 }
 0x831   : > { %v1800_v44 = vmul.f32 %v1792_v36, %v1640_v27 }
 0x832   : > { %v1822_v56 = vpack.c.bf16 %v1818_v47, %v1817_v52 }
 0x833   : > { %v1808_v46 = vadd.f32 1.0, %v1800_v44 }
 0x835   : > { %v1816_v48 = vmul.f32 %v1808_v46, %v1616_v31 }
 0x837   : > { %v1821_v39 = vpack.c.bf16 %v1816_v48, %v1815_v35 }
 0x839   : > { %2386 = vmatprep.mubr.bf16.mxu0 %v1821_v39 }
 0x83a   : > { %2387 = vmatmul.mubr.bf16.gmra.mxu0 %v1822_v56 }
 0x8e9   : > { %v2384_v26 = vpop.f32.mrf.mxu0 }
 0x8ea   : > { %v1930_v45 = vadd.f32 %v2384_v26, %v385_v30 }
 0x8eb   : > { %v1921_v51 = vpop.f32.mrf.mxu0 }
 0x8ec   : > { %v1954_v23 = vadd.f32 %v1930_v45, %v3202_v12  ;;  %v1922_v34 = vadd.f32 %v1921_v51, %v385_v30 }
 0x8ed   : > { %v2385_v8 = vpop.f32.mrf.mxu0 }
 0x8ee   : > { %1962 = vst [vmem:[%s371_s10 + $0x10] sm:$0xff] %v1954_v23  ;;  %v1952_v53 = vadd.f32 %v1922_v34, %v3206_v18  ;;  %v1933_v58 = vadd.f32 %v2385_v8, %v385_v30 }
 0x8ef   : > { %v1924_v1 = vpop.f32.mrf.mxu0 }
 0x8f0   : > { %1960 = vst [vmem:[%s371_s10] sm:$0xff] %v1952_v53  ;;  %v1955_v49 = vadd.f32 %v1933_v58, %v3209_v15  ;;  %v1925_v4 = vadd.f32 %v1924_v1, %v385_v30 }
 0x8f2   : > { %1963 = vst [vmem:[%s371_s10 + $0x18] sm:$0xff] %v1955_v49  ;;  %v1953_v61 = vadd.f32 %v1925_v4, %v3214_v20 }
 0x8f4   : > { %1961 = vst [vmem:[%s371_s10 + $0x8] sm:$0xff] %v1953_v61 }
 0x8fa   : > { %v2388_v62 = vpop.f32.mrf.mxu0 }
 0x8fb   : > { %v1946_v0 = vadd.f32 %v2388_v62, %v385_v30 }
 0x8fc   : > { %v1937_v12 = vpop.f32.mrf.mxu0 }
 0x8fd   : > { %v1958_v63 = vadd.f32 %v1946_v0, %v3224_v14  ;;  %v1938_v7 = vadd.f32 %v1937_v12, %v385_v30 }
 0x8fe   : > { %v2389_v50 = vpop.f32.mrf.mxu0 }
 0x8ff   : > { %1966 = vst [vmem:[%s371_s10 + $0x30] sm:$0xff] %v1958_v63  ;;  %v1956_v18 = vadd.f32 %v1938_v7, %v3230_v32  ;;  %v1949_v10 = vadd.f32 %v2389_v50, %v385_v30 }
 0x900   : > { %v1940_v15 = vpop.f32.mrf.mxu0 }
 0x901   : > { %1964 = vst [vmem:[%s371_s10 + $0x20] sm:$0xff] %v1956_v18  ;;  %v1959_v20 = vadd.f32 %v1949_v10, %v3233_v33  ;;  %v1941_v55 = vadd.f32 %v1940_v15, %v385_v30 }
 0x903   : > { %1967 = vst [vmem:[%s371_s10 + $0x38] sm:$0xff] %v1959_v20  ;;  %v1957_v14 = vadd.f32 %v1941_v55, %v3238_v40 }
 0x905   : > { %1965 = vst [vmem:[%s371_s10 + $0x28] sm:$0xff] %v1957_v14 }
 0x906   : > { %2789 = shalt.err (!%p2786_p3)
}
 0x907   : > { %s2790_s19 = scalar_lea.hbm %s3462_s20, 1024  ;;  %s2794_s26 = scalar_lea.hbm %s3515_s8, 2048 }
 0x908   : > { %p2791_p9 = scmp.ne.s32.totalorder %s3462_s20, %s2790_s19  ;;  %p2795_p12 = scmp.lt.s32.totalorder %s3462_s20, %s3515_s8 }
 0x909   : > { %p2796_p10 = scmp.lt.s32.totalorder %s2794_s26, %s2790_s19 }
 0x90a   : > { %p2792_p2 = pnand %p2791_p9, %p2947_p5 }
 0x90b   : > { %p2797_p7 = por %p2796_p10, %p2795_p12 }
 0x90c   : > { %p2793_p4 = pneg %p2792_p2 }
 0x90e   : > { %p2798_p8 = pnand %p2797_p7, %p2793_p4 }
 0x910   : > { %2801 = shalt.err (!%p2798_p8)
}
 0x911   : > { %s2862_s14 = smov 128   ;;  %s2863_s17 = smov 8  }
 0x912   : > { %2410 = dma.vmem_to_hbm [thread:$0]  (%p2947_p5), %s3457_s12, 1024, %s3462_s20, %s3467_s9, %s2862_s14, %s2862_s14, %s2863_s17  }
 0x913 PF: > { %p2442_p0 = scmp.ge.s32.totalorder %s2848_s30, 2  ;;  %s1997_s23 = sand.u32 1, %s2836_s27  }
 0x914   : > { %s1998_s24 = scalar_lea.sflag [#allocation4], %s1997_s23 }
 0x915   : > { %p2429_p11 = pnand %p2442_p0, %p2951_p6 }
 0x917   : > { %p2430_p1 = pneg %p2429_p11 }
 0x919   : > { %2831 = dma.done.wait (%p2430_p1), %s1998_s24, 1024  }
 0x91a   : > { %2833 = vsyncadd (%p2430_p1), %s1998_s24, 4294966272  ;;  %s3529_s13 = sld [smem:[#allocation16_spill]]  ;;  %p21_p13 = scmp.ge.s32.totalorder %s2934_s11, 4  }
 0x91b   : > { %s3530_s27 = smov %s2840_s28  ;;  %s3531_s28 = smov %s2844_s29 }
 0x91c   : > { %s3533_s30 = smov %s2934_s11  ;;  %23 = sbr.rel (!%p21_p13) target bundleno = 6 (0x6), region = 108 }
 0x920   : > { %s3532_s29 = smov %s3529_s13 }
 0x921   :  { %2003 = vsyncpa [#allocation3], 1 }
 0x922   :  { %2005 = vsyncpa [#allocation3 + $0x1], 1 }
 0x923   :  { %2006 = vsyncpa [#allocation6], 1 }
 0x924   :  { %2007 = vsyncpa [#allocation9], 1 }
 0x925   :  { %2008 = vsyncpa [#allocation4], 1 }
 0x926   :  { %2010 = vsyncpa [#allocation4 + $0x1], 1 }

</bundles_post_ra>
